<compile_context>
chip_gen: v6e
topology: v6e:2x2x1
jax: 0.10.0
libtpu: 0.0.40
codegen_flags: <defaults>
</compile_context>

<pallas_src>
import jax
import jax.numpy as jnp
from jax import lax
from jax.experimental import pallas as pl
from jax.experimental.pallas import tpu as pltpu

LANE = 128
SUBLANE = 8


def make_lstm_fc_kernel(num_layers: int, hidden_size: int, seq_len: int, batch_pad: int):
    H = hidden_size
    T = seq_len
    Bp = batch_pad
    G = 4 * H

    def kernel(*refs):
        # refs: x_flat, (w_ih_l, w_hh_l, b_l) * num_layers, w_fc, b_fc, out_ref, gx0_scratch
        x_ref = refs[0]                                    # (T*Bp, D) bf16, time-major
        w_ih = [refs[1 + 3 * l] for l in range(num_layers)]   # (D_in_l, 4H) bf16
        w_hh = [refs[2 + 3 * l] for l in range(num_layers)]   # (H, 4H) bf16
        b_l = [refs[3 + 3 * l] for l in range(num_layers)]    # (1, 4H) f32
        w_fc_ref = refs[1 + 3 * num_layers]
        b_fc_ref = refs[2 + 3 * num_layers]
        out_ref = refs[3 + 3 * num_layers]
        gx0_ref = refs[4 + 3 * num_layers]                 # (T*Bp, 4H) f32 scratch

        # ---- Hoisted layer-0 input projection: one big MXU dot, bias folded in. ----
        gx0_ref[...] = (jnp.dot(x_ref[...], w_ih[0][...],
                                preferred_element_type=jnp.float32)
                        + b_l[0][...])

        # ---- Pre-broadcast the remaining biases once (not per unrolled step). ----
        bias_b = [jnp.broadcast_to(b_l[l][...], (Bp, G)) for l in range(1, num_layers)]

        def step(t, carry):
            hs, cs = carry                                 # tuples of (Bp, H) f32
            new_h, new_c = [], []
            inp = None                                     # bf16 hand-off between layers
            for l in range(num_layers):
                h_prev_bf = hs[l].astype(jnp.bfloat16)
                if l == 0:
                    off = pl.multiple_of(t * Bp, Bp)
                    gates = (gx0_ref[pl.ds(off, Bp), :]
                             + jnp.dot(h_prev_bf, w_hh[0][...],
                                       preferred_element_type=jnp.float32))
                else:
                    gates = (jnp.dot(inp, w_ih[l][...],
                                     preferred_element_type=jnp.float32)
                             + jnp.dot(h_prev_bf, w_hh[l][...],
                                       preferred_element_type=jnp.float32)
                             + bias_b[l - 1])
                # Full-width activations (2 EUP passes over 4H lanes), then lane slices.
                sig = jax.nn.sigmoid(gates)
                tnh = jnp.tanh(gates)
                i_g = sig[:, 0 * H:1 * H]
                f_g = sig[:, 1 * H:2 * H]
                g_g = tnh[:, 2 * H:3 * H]
                o_g = sig[:, 3 * H:4 * H]

                c_new = f_g * cs[l] + i_g * g_g
                h_new = o_g * jnp.tanh(c_new)
                new_h.append(h_new)
                new_c.append(c_new)
                inp = h_new.astype(jnp.bfloat16)
            return tuple(new_h), tuple(new_c)

        zeros = tuple(jnp.zeros((Bp, H), jnp.float32) for _ in range(num_layers))
        unroll = T if T <= 16 else 4                       # partial unroll for long sequences
        hs, _ = lax.fori_loop(0, T, step, (zeros, zeros), unroll=unroll)

        # Final Linear on the last timestep's top-layer hidden state (lane-dense store).
        h_last = hs[num_layers - 1].astype(jnp.bfloat16)
        out_ref[...] = (jnp.dot(h_last, w_fc_ref[...],
                                preferred_element_type=jnp.float32)
                        + b_fc_ref[...])

    return kernel


def lstm_fc_forward(x_btd, params, *, hidden_size, num_layers, num_keys):
    """x_btd: (B, T, input_size) float32 (batch_first, like the PyTorch module)."""
    B, T, D = x_btd.shape
    H = hidden_size
    Bp = ((max(B, SUBLANE) + SUBLANE - 1) // SUBLANE) * SUBLANE   # batch -> sublane tile
    NKp = params["w_fc"].shape[1]                                  # lane-padded fc width

    # Batch-pad + time-major + bf16 + flatten to (T*Bp, D) host-side so the kernel can
    # run one big layer-0 projection and then index the recurrence axis with cheap,
    # aligned sublane slices of the scratch buffer.
    x_tbd = (jnp.zeros((T, Bp, D), jnp.bfloat16)
             .at[:, :B, :].set(jnp.swapaxes(x_btd, 0, 1).astype(jnp.bfloat16)))
    x_flat = x_tbd.reshape(T * Bp, D)

    inputs = [x_flat]
    for l in range(num_layers):
        inputs += [params[f"w_ih_{l}"], params[f"w_hh_{l}"], params[f"b_{l}"]]
    inputs += [params["w_fc"], params["b_fc"]]

    # Everything resident in VMEM exactly once (no grid -> no double buffering).
    vmem_spec = pl.BlockSpec(memory_space=pltpu.MemorySpace.VMEM)
    in_specs = [vmem_spec] * len(inputs)

    # Explicit VMEM budget with v7x headroom (64 MiB physical there -> cap at 48 MiB).
    in_bytes = sum(int(a.size) * a.dtype.itemsize for a in inputs)
    out_bytes = Bp * NKp * 4
    scratch_bytes = T * Bp * 4 * H * 4
    need = in_bytes + out_bytes + scratch_bytes
    vmem_limit = int(min(max(2 * need + (4 << 20), 8 << 20), 48 << 20))

    kernel = make_lstm_fc_kernel(num_layers, H, T, Bp)

    out = pl.pallas_call(
        kernel,
        out_shape=jax.ShapeDtypeStruct((Bp, NKp), jnp.float32),
        in_specs=in_specs,
        out_specs=vmem_spec,
        scratch_shapes=[pltpu.VMEM((T * Bp, 4 * H), jnp.float32)],
        compiler_params=pltpu.CompilerParams(vmem_limit_bytes=vmem_limit),
    )(*inputs)
    return out[:B, :num_keys]


def init_params(key, input_size, hidden_size, num_layers, num_keys):
    """Deterministic synthetic params (PyTorch-style uniform init), kernel-ready:
       split W_ih^T / W_hh^T in bf16, folded bias (b_ih + b_hh) in f32,
       lane-padded FC weights."""
    H = hidden_size
    k = 1.0 / jnp.sqrt(jnp.float32(H))
    params = {}
    for l in range(num_layers):
        d_in = input_size if l == 0 else H
        key, k1, k2, k3, k4 = jax.random.split(key, 5)
        w_ih = jax.random.uniform(k1, (d_in, 4 * H), jnp.float32, -k, k)   # torch W_ih^T
        w_hh = jax.random.uniform(k2, (H, 4 * H), jnp.float32, -k, k)      # torch W_hh^T
        b_ih = jax.random.uniform(k3, (4 * H,), jnp.float32, -k, k)
        b_hh = jax.random.uniform(k4, (4 * H,), jnp.float32, -k, k)
        params[f"w_ih_{l}"] = w_ih.astype(jnp.bfloat16)
        params[f"w_hh_{l}"] = w_hh.astype(jnp.bfloat16)
        params[f"b_{l}"] = (b_ih + b_hh).reshape(1, 4 * H).astype(jnp.float32)

    key, k5, k6 = jax.random.split(key, 3)
    nk_p = ((num_keys + LANE - 1) // LANE) * LANE
    w_fc = jax.random.uniform(k5, (H, num_keys), jnp.float32, -k, k)
    b_fc = jax.random.uniform(k6, (num_keys,), jnp.float32, -k, k)
    params["w_fc"] = (jnp.zeros((H, nk_p), jnp.bfloat16)
                      .at[:, :num_keys].set(w_fc.astype(jnp.bfloat16)))
    params["b_fc"] = jnp.zeros((1, nk_p), jnp.float32).at[0, :num_keys].set(b_fc)
    return params


def reference_forward(x_btd, params, *, hidden_size, num_layers, num_keys):
    """Pure-JAX reference with identical semantics (models the kernel's bf16 MXU operands).
    Note: casting h to bf16 every timestep accumulates rounding relative to a pure-f32
    PyTorch LSTM, so tolerance vs. torch loosens slowly with T; the kernel and this
    reference share the same rounding."""
    B, T, _ = x_btd.shape
    H = hidden_size

    def bf16_round(a):
        return a.astype(jnp.bfloat16).astype(jnp.float32)

    h = [jnp.zeros((B, H), jnp.float32) for _ in range(num_layers)]
    c = [jnp.zeros((B, H), jnp.float32) for _ in range(num_layers)]
    for t in range(T):
        inp = bf16_round(x_btd[:, t, :])
        for l in range(num_layers):
            w_x = params[f"w_ih_{l}"].astype(jnp.float32)
            w_h = params[f"w_hh_{l}"].astype(jnp.float32)
            gates = inp @ w_x + bf16_round(h[l]) @ w_h + params[f"b_{l}"]
            i_g = jax.nn.sigmoid(gates[:, 0 * H:1 * H])
            f_g = jax.nn.sigmoid(gates[:, 1 * H:2 * H])
            g_g = jnp.tanh(gates[:, 2 * H:3 * H])
            o_g = jax.nn.sigmoid(gates[:, 3 * H:4 * H])
            c[l] = f_g * c[l] + i_g * g_g
            h[l] = o_g * jnp.tanh(c[l])
            inp = bf16_round(h[l])
    hl = bf16_round(h[-1])
    out = hl @ params["w_fc"].astype(jnp.float32) + params["b_fc"]
    return out[:, :num_keys]


if __name__ == "__main__":
    # Small shapes consistent with the module's forward pass.
    B, T = 2, 8
    input_size, hidden_size, num_layers, num_keys = 32, 32, 2, 16

    key = jax.random.PRNGKey(0)
    key, kx, kp = jax.random.split(key, 3)
    x = jax.random.normal(kx, (B, T, input_size), jnp.float32)
    params = init_params(kp, input_size, hidden_size, num_layers, num_keys)

    out = lstm_fc_forward(x, params, hidden_size=hidden_size,
                          num_layers=num_layers, num_keys=num_keys)
    out = jax.block_until_ready(out)

    ref = reference_forward(x, params, hidden_size=hidden_size,
                            num_layers=num_layers, num_keys=num_keys)
    assert out.shape == (B, num_keys)
    assert jnp.allclose(out, ref, atol=2e-2, rtol=2e-2), (out, ref)

    print("KERNEL_OK")
</pallas_src>

<mosaic_0001>
module attributes {stable_mosaic.version = 11 : i64} {
  func.func @kernel(%arg0: memref<64x32xbf16, #tpu.memory_space<vmem>>, %arg1: memref<32x128xbf16, #tpu.memory_space<vmem>>, %arg2: memref<32x128xbf16, #tpu.memory_space<vmem>>, %arg3: memref<1x128xf32, #tpu.memory_space<vmem>>, %arg4: memref<32x128xbf16, #tpu.memory_space<vmem>>, %arg5: memref<32x128xbf16, #tpu.memory_space<vmem>>, %arg6: memref<1x128xf32, #tpu.memory_space<vmem>>, %arg7: memref<32x128xbf16, #tpu.memory_space<vmem>>, %arg8: memref<1x128xf32, #tpu.memory_space<vmem>>, %arg9: memref<8x128xf32, #tpu.memory_space<vmem>>, %arg10: memref<64x128xf32, #tpu.memory_space<vmem>>) attributes {dimension_semantics = [], scalar_prefetch = 0 : i64, scratch_operands = 1 : i64, tpu.core_type = #tpu.core_type<tc>} {
    %c0 = arith.constant 0 : index
    %c0_0 = arith.constant 0 : index
    %0 = vector.load %arg0[%c0, %c0_0] : memref<64x32xbf16, #tpu.memory_space<vmem>>, vector<64x32xbf16>
    %c0_1 = arith.constant 0 : index
    %c0_2 = arith.constant 0 : index
    %1 = vector.load %arg1[%c0_1, %c0_2] : memref<32x128xbf16, #tpu.memory_space<vmem>>, vector<32x128xbf16>
    %cst = arith.constant dense<0.000000e+00> : vector<64x128xf32>
    %2 = tpu.matmul %0, %1, %cst {dimension_numbers = #tpu.dot_dimension_numbers<[1], [0], [0], [1], [0, 0, 1, 1], [], []>} : vector<64x32xbf16>, vector<32x128xbf16>, vector<64x128xf32> -> vector<64x128xf32>
    %c0_3 = arith.constant 0 : index
    %c0_4 = arith.constant 0 : index
    %3 = vector.load %arg3[%c0_3, %c0_4] : memref<1x128xf32, #tpu.memory_space<vmem>>, vector<1x128xf32>
    %4 = vector.broadcast %3 : vector<1x128xf32> to vector<64x128xf32>
    %5 = arith.addf %2, %4 : vector<64x128xf32>
    %c0_5 = arith.constant 0 : index
    %c0_6 = arith.constant 0 : index
    %6 = vector.load %arg10[%c0_5, %c0_6] : memref<64x128xf32, #tpu.memory_space<vmem>>, vector<64x128xf32>
    tpu.vector_store %arg10[%c0_5, %c0_6], %5 {strides = array<i32>} : memref<64x128xf32, #tpu.memory_space<vmem>>, vector<64x128xf32>,
    %c0_7 = arith.constant 0 : index
    %c0_8 = arith.constant 0 : index
    %7 = vector.load %arg6[%c0_7, %c0_8] : memref<1x128xf32, #tpu.memory_space<vmem>>, vector<1x128xf32>
    %8 = vector.shape_cast %7 : vector<1x128xf32> to vector<1x128xf32>
    %9 = vector.broadcast %8 : vector<1x128xf32> to vector<8x128xf32>
    %cst_9 = arith.constant 0.000000e+00 : f32
    %10 = vector.broadcast %cst_9 : f32 to vector<8x32xf32>
    %cst_10 = arith.constant 0.000000e+00 : f32
    %11 = vector.broadcast %cst_10 : f32 to vector<8x32xf32>
    %c0_i32 = arith.constant 0 : i32
    %12 = arith.truncf %10 : vector<8x32xf32> to vector<8x32xbf16>
    %c8_i32 = arith.constant 8 : i32
    %13 = arith.muli %c0_i32, %c8_i32 : i32
    %14 = tpu.assume_multiple %13, 8 : i32
    %15 = arith.index_cast %14 : i32 to index
    %c0_11 = arith.constant 0 : index
    %16 = vector.load %arg10[%15, %c0_11] : memref<64x128xf32, #tpu.memory_space<vmem>>, vector<8x128xf32>
    %c0_12 = arith.constant 0 : index
    %c0_13 = arith.constant 0 : index
    %17 = vector.load %arg2[%c0_12, %c0_13] : memref<32x128xbf16, #tpu.memory_space<vmem>>, vector<32x128xbf16>
    %cst_14 = arith.constant dense<0.000000e+00> : vector<8x128xf32>
    %18 = tpu.matmul %12, %17, %cst_14 {dimension_numbers = #tpu.dot_dimension_numbers<[1], [0], [0], [1], [0, 0, 1, 1], [], []>} : vector<8x32xbf16>, vector<32x128xbf16>, vector<8x128xf32> -> vector<8x128xf32>
    %19 = arith.addf %16, %18 : vector<8x128xf32>
    %20 = arith.negf %19 : vector<8x128xf32>
    %21 = math.exp %20 : vector<8x128xf32>
    %cst_15 = arith.constant 1.000000e+00 : f32
    %22 = vector.broadcast %cst_15 : f32 to vector<8x128xf32>
    %23 = arith.addf %22, %21 : vector<8x128xf32>
    %24 = arith.divf %22, %23 : vector<8x128xf32>
    %25 = math.tanh %19 : vector<8x128xf32>
    %26 = vector.extract_strided_slice %24 {offsets = [0, 0], sizes = [8, 32], strides = [1, 1]} : vector<8x128xf32> to vector<8x32xf32>
    %27 = vector.extract_strided_slice %24 {offsets = [0, 32], sizes = [8, 32], strides = [1, 1]} : vector<8x128xf32> to vector<8x32xf32>
    %28 = vector.extract_strided_slice %25 {offsets = [0, 64], sizes = [8, 32], strides = [1, 1]} : vector<8x128xf32> to vector<8x32xf32>
    %29 = vector.extract_strided_slice %24 {offsets = [0, 96], sizes = [8, 32], strides = [1, 1]} : vector<8x128xf32> to vector<8x32xf32>
    %30 = arith.mulf %27, %10 : vector<8x32xf32>
    %31 = arith.mulf %26, %28 : vector<8x32xf32>
    %32 = arith.addf %30, %31 : vector<8x32xf32>
    %33 = math.tanh %32 : vector<8x32xf32>
    %34 = arith.mulf %29, %33 : vector<8x32xf32>
    %35 = arith.truncf %34 : vector<8x32xf32> to vector<8x32xbf16>
    %36 = arith.truncf %11 : vector<8x32xf32> to vector<8x32xbf16>
    %c0_16 = arith.constant 0 : index
    %c0_17 = arith.constant 0 : index
    %37 = vector.load %arg4[%c0_16, %c0_17] : memref<32x128xbf16, #tpu.memory_space<vmem>>, vector<32x128xbf16>
    %cst_18 = arith.constant dense<0.000000e+00> : vector<8x128xf32>
    %38 = tpu.matmul %35, %37, %cst_18 {dimension_numbers = #tpu.dot_dimension_numbers<[1], [0], [0], [1], [0, 0, 1, 1], [], []>} : vector<8x32xbf16>, vector<32x128xbf16>, vector<8x128xf32> -> vector<8x128xf32>
    %c0_19 = arith.constant 0 : index
    %c0_20 = arith.constant 0 : index
    %39 = vector.load %arg5[%c0_19, %c0_20] : memref<32x128xbf16, #tpu.memory_space<vmem>>, vector<32x128xbf16>
    %cst_21 = arith.constant dense<0.000000e+00> : vector<8x128xf32>
    %40 = tpu.matmul %36, %39, %cst_21 {dimension_numbers = #tpu.dot_dimension_numbers<[1], [0], [0], [1], [0, 0, 1, 1], [], []>} : vector<8x32xbf16>, vector<32x128xbf16>, vector<8x128xf32> -> vector<8x128xf32>
    %41 = arith.addf %38, %40 : vector<8x128xf32>
    %42 = arith.addf %41, %9 : vector<8x128xf32>
    %43 = arith.negf %42 : vector<8x128xf32>
    %44 = math.exp %43 : vector<8x128xf32>
    %cst_22 = arith.constant 1.000000e+00 : f32
    %45 = vector.broadcast %cst_22 : f32 to vector<8x128xf32>
    %46 = arith.addf %45, %44 : vector<8x128xf32>
    %47 = arith.divf %45, %46 : vector<8x128xf32>
    %48 = math.tanh %42 : vector<8x128xf32>
    %49 = vector.extract_strided_slice %47 {offsets = [0, 0], sizes = [8, 32], strides = [1, 1]} : vector<8x128xf32> to vector<8x32xf32>
    %50 = vector.extract_strided_slice %47 {offsets = [0, 32], sizes = [8, 32], strides = [1, 1]} : vector<8x128xf32> to vector<8x32xf32>
    %51 = vector.extract_strided_slice %48 {offsets = [0, 64], sizes = [8, 32], strides = [1, 1]} : vector<8x128xf32> to vector<8x32xf32>
    %52 = vector.extract_strided_slice %47 {offsets = [0, 96], sizes = [8, 32], strides = [1, 1]} : vector<8x128xf32> to vector<8x32xf32>
    %53 = arith.mulf %50, %11 : vector<8x32xf32>
    %54 = arith.mulf %49, %51 : vector<8x32xf32>
    %55 = arith.addf %53, %54 : vector<8x32xf32>
    %56 = math.tanh %55 : vector<8x32xf32>
    %57 = arith.mulf %52, %56 : vector<8x32xf32>
    %c1_i32 = arith.constant 1 : i32
    %58 = arith.truncf %34 : vector<8x32xf32> to vector<8x32xbf16>
    %c8_i32_23 = arith.constant 8 : i32
    %59 = arith.muli %c1_i32, %c8_i32_23 : i32
    %60 = tpu.assume_multiple %59, 8 : i32
    %61 = arith.index_cast %60 : i32 to index
    %c0_24 = arith.constant 0 : index
    %62 = vector.load %arg10[%61, %c0_24] : memref<64x128xf32, #tpu.memory_space<vmem>>, vector<8x128xf32>
    %c0_25 = arith.constant 0 : index
    %c0_26 = arith.constant 0 : index
    %63 = vector.load %arg2[%c0_25, %c0_26] : memref<32x128xbf16, #tpu.memory_space<vmem>>, vector<32x128xbf16>
    %cst_27 = arith.constant dense<0.000000e+00> : vector<8x128xf32>
    %64 = tpu.matmul %58, %63, %cst_27 {dimension_numbers = #tpu.dot_dimension_numbers<[1], [0], [0], [1], [0, 0, 1, 1], [], []>} : vector<8x32xbf16>, vector<32x128xbf16>, vector<8x128xf32> -> vector<8x128xf32>
    %65 = arith.addf %62, %64 : vector<8x128xf32>
    %66 = arith.negf %65 : vector<8x128xf32>
    %67 = math.exp %66 : vector<8x128xf32>
    %cst_28 = arith.constant 1.000000e+00 : f32
    %68 = vector.broadcast %cst_28 : f32 to vector<8x128xf32>
    %69 = arith.addf %68, %67 : vector<8x128xf32>
    %70 = arith.divf %68, %69 : vector<8x128xf32>
    %71 = math.tanh %65 : vector<8x128xf32>
    %72 = vector.extract_strided_slice %70 {offsets = [0, 0], sizes = [8, 32], strides = [1, 1]} : vector<8x128xf32> to vector<8x32xf32>
    %73 = vector.extract_strided_slice %70 {offsets = [0, 32], sizes = [8, 32], strides = [1, 1]} : vector<8x128xf32> to vector<8x32xf32>
    %74 = vector.extract_strided_slice %71 {offsets = [0, 64], sizes = [8, 32], strides = [1, 1]} : vector<8x128xf32> to vector<8x32xf32>
    %75 = vector.extract_strided_slice %70 {offsets = [0, 96], sizes = [8, 32], strides = [1, 1]} : vector<8x128xf32> to vector<8x32xf32>
    %76 = arith.mulf %73, %32 : vector<8x32xf32>
    %77 = arith.mulf %72, %74 : vector<8x32xf32>
    %78 = arith.addf %76, %77 : vector<8x32xf32>
    %79 = math.tanh %78 : vector<8x32xf32>
    %80 = arith.mulf %75, %79 : vector<8x32xf32>
    %81 = arith.truncf %80 : vector<8x32xf32> to vector<8x32xbf16>
    %82 = arith.truncf %57 : vector<8x32xf32> to vector<8x32xbf16>
    %c0_29 = arith.constant 0 : index
    %c0_30 = arith.constant 0 : index
    %83 = vector.load %arg4[%c0_29, %c0_30] : memref<32x128xbf16, #tpu.memory_space<vmem>>, vector<32x128xbf16>
    %cst_31 = arith.constant dense<0.000000e+00> : vector<8x128xf32>
    %84 = tpu.matmul %81, %83, %cst_31 {dimension_numbers = #tpu.dot_dimension_numbers<[1], [0], [0], [1], [0, 0, 1, 1], [], []>} : vector<8x32xbf16>, vector<32x128xbf16>, vector<8x128xf32> -> vector<8x128xf32>
    %c0_32 = arith.constant 0 : index
    %c0_33 = arith.constant 0 : index
    %85 = vector.load %arg5[%c0_32, %c0_33] : memref<32x128xbf16, #tpu.memory_space<vmem>>, vector<32x128xbf16>
    %cst_34 = arith.constant dense<0.000000e+00> : vector<8x128xf32>
    %86 = tpu.matmul %82, %85, %cst_34 {dimension_numbers = #tpu.dot_dimension_numbers<[1], [0], [0], [1], [0, 0, 1, 1], [], []>} : vector<8x32xbf16>, vector<32x128xbf16>, vector<8x128xf32> -> vector<8x128xf32>
    %87 = arith.addf %84, %86 : vector<8x128xf32>
    %88 = arith.addf %87, %9 : vector<8x128xf32>
    %89 = arith.negf %88 : vector<8x128xf32>
    %90 = math.exp %89 : vector<8x128xf32>
    %cst_35 = arith.constant 1.000000e+00 : f32
    %91 = vector.broadcast %cst_35 : f32 to vector<8x128xf32>
    %92 = arith.addf %91, %90 : vector<8x128xf32>
    %93 = arith.divf %91, %92 : vector<8x128xf32>
    %94 = math.tanh %88 : vector<8x128xf32>
    %95 = vector.extract_strided_slice %93 {offsets = [0, 0], sizes = [8, 32], strides = [1, 1]} : vector<8x128xf32> to vector<8x32xf32>
    %96 = vector.extract_strided_slice %93 {offsets = [0, 32], sizes = [8, 32], strides = [1, 1]} : vector<8x128xf32> to vector<8x32xf32>
    %97 = vector.extract_strided_slice %94 {offsets = [0, 64], sizes = [8, 32], strides = [1, 1]} : vector<8x128xf32> to vector<8x32xf32>
    %98 = vector.extract_strided_slice %93 {offsets = [0, 96], sizes = [8, 32], strides = [1, 1]} : vector<8x128xf32> to vector<8x32xf32>
    %99 = arith.mulf %96, %55 : vector<8x32xf32>
    %100 = arith.mulf %95, %97 : vector<8x32xf32>
    %101 = arith.addf %99, %100 : vector<8x32xf32>
    %102 = math.tanh %101 : vector<8x32xf32>
    %103 = arith.mulf %98, %102 : vector<8x32xf32>
    %c2_i32 = arith.constant 2 : i32
    %104 = arith.truncf %80 : vector<8x32xf32> to vector<8x32xbf16>
    %c8_i32_36 = arith.constant 8 : i32
    %105 = arith.muli %c2_i32, %c8_i32_36 : i32
    %106 = tpu.assume_multiple %105, 8 : i32
    %107 = arith.index_cast %106 : i32 to index
    %c0_37 = arith.constant 0 : index
    %108 = vector.load %arg10[%107, %c0_37] : memref<64x128xf32, #tpu.memory_space<vmem>>, vector<8x128xf32>
    %c0_38 = arith.constant 0 : index
    %c0_39 = arith.constant 0 : index
    %109 = vector.load %arg2[%c0_38, %c0_39] : memref<32x128xbf16, #tpu.memory_space<vmem>>, vector<32x128xbf16>
    %cst_40 = arith.constant dense<0.000000e+00> : vector<8x128xf32>
    %110 = tpu.matmul %104, %109, %cst_40 {dimension_numbers = #tpu.dot_dimension_numbers<[1], [0], [0], [1], [0, 0, 1, 1], [], []>} : vector<8x32xbf16>, vector<32x128xbf16>, vector<8x128xf32> -> vector<8x128xf32>
    %111 = arith.addf %108, %110 : vector<8x128xf32>
    %112 = arith.negf %111 : vector<8x128xf32>
    %113 = math.exp %112 : vector<8x128xf32>
    %cst_41 = arith.constant 1.000000e+00 : f32
    %114 = vector.broadcast %cst_41 : f32 to vector<8x128xf32>
    %115 = arith.addf %114, %113 : vector<8x128xf32>
    %116 = arith.divf %114, %115 : vector<8x128xf32>
    %117 = math.tanh %111 : vector<8x128xf32>
    %118 = vector.extract_strided_slice %116 {offsets = [0, 0], sizes = [8, 32], strides = [1, 1]} : vector<8x128xf32> to vector<8x32xf32>
    %119 = vector.extract_strided_slice %116 {offsets = [0, 32], sizes = [8, 32], strides = [1, 1]} : vector<8x128xf32> to vector<8x32xf32>
    %120 = vector.extract_strided_slice %117 {offsets = [0, 64], sizes = [8, 32], strides = [1, 1]} : vector<8x128xf32> to vector<8x32xf32>
    %121 = vector.extract_strided_slice %116 {offsets = [0, 96], sizes = [8, 32], strides = [1, 1]} : vector<8x128xf32> to vector<8x32xf32>
    %122 = arith.mulf %119, %78 : vector<8x32xf32>
    %123 = arith.mulf %118, %120 : vector<8x32xf32>
    %124 = arith.addf %122, %123 : vector<8x32xf32>
    %125 = math.tanh %124 : vector<8x32xf32>
    %126 = arith.mulf %121, %125 : vector<8x32xf32>
    %127 = arith.truncf %126 : vector<8x32xf32> to vector<8x32xbf16>
    %128 = arith.truncf %103 : vector<8x32xf32> to vector<8x32xbf16>
    %c0_42 = arith.constant 0 : index
    %c0_43 = arith.constant 0 : index
    %129 = vector.load %arg4[%c0_42, %c0_43] : memref<32x128xbf16, #tpu.memory_space<vmem>>, vector<32x128xbf16>
    %cst_44 = arith.constant dense<0.000000e+00> : vector<8x128xf32>
    %130 = tpu.matmul %127, %129, %cst_44 {dimension_numbers = #tpu.dot_dimension_numbers<[1], [0], [0], [1], [0, 0, 1, 1], [], []>} : vector<8x32xbf16>, vector<32x128xbf16>, vector<8x128xf32> -> vector<8x128xf32>
    %c0_45 = arith.constant 0 : index
    %c0_46 = arith.constant 0 : index
    %131 = vector.load %arg5[%c0_45, %c0_46] : memref<32x128xbf16, #tpu.memory_space<vmem>>, vector<32x128xbf16>
    %cst_47 = arith.constant dense<0.000000e+00> : vector<8x128xf32>
    %132 = tpu.matmul %128, %131, %cst_47 {dimension_numbers = #tpu.dot_dimension_numbers<[1], [0], [0], [1], [0, 0, 1, 1], [], []>} : vector<8x32xbf16>, vector<32x128xbf16>, vector<8x128xf32> -> vector<8x128xf32>
    %133 = arith.addf %130, %132 : vector<8x128xf32>
    %134 = arith.addf %133, %9 : vector<8x128xf32>
    %135 = arith.negf %134 : vector<8x128xf32>
    %136 = math.exp %135 : vector<8x128xf32>
    %cst_48 = arith.constant 1.000000e+00 : f32
    %137 = vector.broadcast %cst_48 : f32 to vector<8x128xf32>
    %138 = arith.addf %137, %136 : vector<8x128xf32>
    %139 = arith.divf %137, %138 : vector<8x128xf32>
    %140 = math.tanh %134 : vector<8x128xf32>
    %141 = vector.extract_strided_slice %139 {offsets = [0, 0], sizes = [8, 32], strides = [1, 1]} : vector<8x128xf32> to vector<8x32xf32>
    %142 = vector.extract_strided_slice %139 {offsets = [0, 32], sizes = [8, 32], strides = [1, 1]} : vector<8x128xf32> to vector<8x32xf32>
    %143 = vector.extract_strided_slice %140 {offsets = [0, 64], sizes = [8, 32], strides = [1, 1]} : vector<8x128xf32> to vector<8x32xf32>
    %144 = vector.extract_strided_slice %139 {offsets = [0, 96], sizes = [8, 32], strides = [1, 1]} : vector<8x128xf32> to vector<8x32xf32>
    %145 = arith.mulf %142, %101 : vector<8x32xf32>
    %146 = arith.mulf %141, %143 : vector<8x32xf32>
    %147 = arith.addf %145, %146 : vector<8x32xf32>
    %148 = math.tanh %147 : vector<8x32xf32>
    %149 = arith.mulf %144, %148 : vector<8x32xf32>
    %c3_i32 = arith.constant 3 : i32
    %150 = arith.truncf %126 : vector<8x32xf32> to vector<8x32xbf16>
    %c8_i32_49 = arith.constant 8 : i32
    %151 = arith.muli %c3_i32, %c8_i32_49 : i32
    %152 = tpu.assume_multiple %151, 8 : i32
    %153 = arith.index_cast %152 : i32 to index
    %c0_50 = arith.constant 0 : index
    %154 = vector.load %arg10[%153, %c0_50] : memref<64x128xf32, #tpu.memory_space<vmem>>, vector<8x128xf32>
    %c0_51 = arith.constant 0 : index
    %c0_52 = arith.constant 0 : index
    %155 = vector.load %arg2[%c0_51, %c0_52] : memref<32x128xbf16, #tpu.memory_space<vmem>>, vector<32x128xbf16>
    %cst_53 = arith.constant dense<0.000000e+00> : vector<8x128xf32>
    %156 = tpu.matmul %150, %155, %cst_53 {dimension_numbers = #tpu.dot_dimension_numbers<[1], [0], [0], [1], [0, 0, 1, 1], [], []>} : vector<8x32xbf16>, vector<32x128xbf16>, vector<8x128xf32> -> vector<8x128xf32>
    %157 = arith.addf %154, %156 : vector<8x128xf32>
    %158 = arith.negf %157 : vector<8x128xf32>
    %159 = math.exp %158 : vector<8x128xf32>
    %cst_54 = arith.constant 1.000000e+00 : f32
    %160 = vector.broadcast %cst_54 : f32 to vector<8x128xf32>
    %161 = arith.addf %160, %159 : vector<8x128xf32>
    %162 = arith.divf %160, %161 : vector<8x128xf32>
    %163 = math.tanh %157 : vector<8x128xf32>
    %164 = vector.extract_strided_slice %162 {offsets = [0, 0], sizes = [8, 32], strides = [1, 1]} : vector<8x128xf32> to vector<8x32xf32>
    %165 = vector.extract_strided_slice %162 {offsets = [0, 32], sizes = [8, 32], strides = [1, 1]} : vector<8x128xf32> to vector<8x32xf32>
    %166 = vector.extract_strided_slice %163 {offsets = [0, 64], sizes = [8, 32], strides = [1, 1]} : vector<8x128xf32> to vector<8x32xf32>
    %167 = vector.extract_strided_slice %162 {offsets = [0, 96], sizes = [8, 32], strides = [1, 1]} : vector<8x128xf32> to vector<8x32xf32>
    %168 = arith.mulf %165, %124 : vector<8x32xf32>
    %169 = arith.mulf %164, %166 : vector<8x32xf32>
    %170 = arith.addf %168, %169 : vector<8x32xf32>
    %171 = math.tanh %170 : vector<8x32xf32>
    %172 = arith.mulf %167, %171 : vector<8x32xf32>
    %173 = arith.truncf %172 : vector<8x32xf32> to vector<8x32xbf16>
    %174 = arith.truncf %149 : vector<8x32xf32> to vector<8x32xbf16>
    %c0_55 = arith.constant 0 : index
    %c0_56 = arith.constant 0 : index
    %175 = vector.load %arg4[%c0_55, %c0_56] : memref<32x128xbf16, #tpu.memory_space<vmem>>, vector<32x128xbf16>
    %cst_57 = arith.constant dense<0.000000e+00> : vector<8x128xf32>
    %176 = tpu.matmul %173, %175, %cst_57 {dimension_numbers = #tpu.dot_dimension_numbers<[1], [0], [0], [1], [0, 0, 1, 1], [], []>} : vector<8x32xbf16>, vector<32x128xbf16>, vector<8x128xf32> -> vector<8x128xf32>
    %c0_58 = arith.constant 0 : index
    %c0_59 = arith.constant 0 : index
    %177 = vector.load %arg5[%c0_58, %c0_59] : memref<32x128xbf16, #tpu.memory_space<vmem>>, vector<32x128xbf16>
    %cst_60 = arith.constant dense<0.000000e+00> : vector<8x128xf32>
    %178 = tpu.matmul %174, %177, %cst_60 {dimension_numbers = #tpu.dot_dimension_numbers<[1], [0], [0], [1], [0, 0, 1, 1], [], []>} : vector<8x32xbf16>, vector<32x128xbf16>, vector<8x128xf32> -> vector<8x128xf32>
    %179 = arith.addf %176, %178 : vector<8x128xf32>
    %180 = arith.addf %179, %9 : vector<8x128xf32>
    %181 = arith.negf %180 : vector<8x128xf32>
    %182 = math.exp %181 : vector<8x128xf32>
    %cst_61 = arith.constant 1.000000e+00 : f32
    %183 = vector.broadcast %cst_61 : f32 to vector<8x128xf32>
    %184 = arith.addf %183, %182 : vector<8x128xf32>
    %185 = arith.divf %183, %184 : vector<8x128xf32>
    %186 = math.tanh %180 : vector<8x128xf32>
    %187 = vector.extract_strided_slice %185 {offsets = [0, 0], sizes = [8, 32], strides = [1, 1]} : vector<8x128xf32> to vector<8x32xf32>
    %188 = vector.extract_strided_slice %185 {offsets = [0, 32], sizes = [8, 32], strides = [1, 1]} : vector<8x128xf32> to vector<8x32xf32>
    %189 = vector.extract_strided_slice %186 {offsets = [0, 64], sizes = [8, 32], strides = [1, 1]} : vector<8x128xf32> to vector<8x32xf32>
    %190 = vector.extract_strided_slice %185 {offsets = [0, 96], sizes = [8, 32], strides = [1, 1]} : vector<8x128xf32> to vector<8x32xf32>
    %191 = arith.mulf %188, %147 : vector<8x32xf32>
    %192 = arith.mulf %187, %189 : vector<8x32xf32>
    %193 = arith.addf %191, %192 : vector<8x32xf32>
    %194 = math.tanh %193 : vector<8x32xf32>
    %195 = arith.mulf %190, %194 : vector<8x32xf32>
    %c4_i32 = arith.constant 4 : i32
    %196 = arith.truncf %172 : vector<8x32xf32> to vector<8x32xbf16>
    %c8_i32_62 = arith.constant 8 : i32
    %197 = arith.muli %c4_i32, %c8_i32_62 : i32
    %198 = tpu.assume_multiple %197, 8 : i32
    %199 = arith.index_cast %198 : i32 to index
    %c0_63 = arith.constant 0 : index
    %200 = vector.load %arg10[%199, %c0_63] : memref<64x128xf32, #tpu.memory_space<vmem>>, vector<8x128xf32>
    %c0_64 = arith.constant 0 : index
    %c0_65 = arith.constant 0 : index
    %201 = vector.load %arg2[%c0_64, %c0_65] : memref<32x128xbf16, #tpu.memory_space<vmem>>, vector<32x128xbf16>
    %cst_66 = arith.constant dense<0.000000e+00> : vector<8x128xf32>
    %202 = tpu.matmul %196, %201, %cst_66 {dimension_numbers = #tpu.dot_dimension_numbers<[1], [0], [0], [1], [0, 0, 1, 1], [], []>} : vector<8x32xbf16>, vector<32x128xbf16>, vector<8x128xf32> -> vector<8x128xf32>
    %203 = arith.addf %200, %202 : vector<8x128xf32>
    %204 = arith.negf %203 : vector<8x128xf32>
    %205 = math.exp %204 : vector<8x128xf32>
    %cst_67 = arith.constant 1.000000e+00 : f32
    %206 = vector.broadcast %cst_67 : f32 to vector<8x128xf32>
    %207 = arith.addf %206, %205 : vector<8x128xf32>
    %208 = arith.divf %206, %207 : vector<8x128xf32>
    %209 = math.tanh %203 : vector<8x128xf32>
    %210 = vector.extract_strided_slice %208 {offsets = [0, 0], sizes = [8, 32], strides = [1, 1]} : vector<8x128xf32> to vector<8x32xf32>
    %211 = vector.extract_strided_slice %208 {offsets = [0, 32], sizes = [8, 32], strides = [1, 1]} : vector<8x128xf32> to vector<8x32xf32>
    %212 = vector.extract_strided_slice %209 {offsets = [0, 64], sizes = [8, 32], strides = [1, 1]} : vector<8x128xf32> to vector<8x32xf32>
    %213 = vector.extract_strided_slice %208 {offsets = [0, 96], sizes = [8, 32], strides = [1, 1]} : vector<8x128xf32> to vector<8x32xf32>
    %214 = arith.mulf %211, %170 : vector<8x32xf32>
    %215 = arith.mulf %210, %212 : vector<8x32xf32>
    %216 = arith.addf %214, %215 : vector<8x32xf32>
    %217 = math.tanh %216 : vector<8x32xf32>
    %218 = arith.mulf %213, %217 : vector<8x32xf32>
    %219 = arith.truncf %218 : vector<8x32xf32> to vector<8x32xbf16>
    %220 = arith.truncf %195 : vector<8x32xf32> to vector<8x32xbf16>
    %c0_68 = arith.constant 0 : index
    %c0_69 = arith.constant 0 : index
    %221 = vector.load %arg4[%c0_68, %c0_69] : memref<32x128xbf16, #tpu.memory_space<vmem>>, vector<32x128xbf16>
    %cst_70 = arith.constant dense<0.000000e+00> : vector<8x128xf32>
    %222 = tpu.matmul %219, %221, %cst_70 {dimension_numbers = #tpu.dot_dimension_numbers<[1], [0], [0], [1], [0, 0, 1, 1], [], []>} : vector<8x32xbf16>, vector<32x128xbf16>, vector<8x128xf32> -> vector<8x128xf32>
    %c0_71 = arith.constant 0 : index
    %c0_72 = arith.constant 0 : index
    %223 = vector.load %arg5[%c0_71, %c0_72] : memref<32x128xbf16, #tpu.memory_space<vmem>>, vector<32x128xbf16>
    %cst_73 = arith.constant dense<0.000000e+00> : vector<8x128xf32>
    %224 = tpu.matmul %220, %223, %cst_73 {dimension_numbers = #tpu.dot_dimension_numbers<[1], [0], [0], [1], [0, 0, 1, 1], [], []>} : vector<8x32xbf16>, vector<32x128xbf16>, vector<8x128xf32> -> vector<8x128xf32>
    %225 = arith.addf %222, %224 : vector<8x128xf32>
    %226 = arith.addf %225, %9 : vector<8x128xf32>
    %227 = arith.negf %226 : vector<8x128xf32>
    %228 = math.exp %227 : vector<8x128xf32>
    %cst_74 = arith.constant 1.000000e+00 : f32
    %229 = vector.broadcast %cst_74 : f32 to vector<8x128xf32>
    %230 = arith.addf %229, %228 : vector<8x128xf32>
    %231 = arith.divf %229, %230 : vector<8x128xf32>
    %232 = math.tanh %226 : vector<8x128xf32>
    %233 = vector.extract_strided_slice %231 {offsets = [0, 0], sizes = [8, 32], strides = [1, 1]} : vector<8x128xf32> to vector<8x32xf32>
    %234 = vector.extract_strided_slice %231 {offsets = [0, 32], sizes = [8, 32], strides = [1, 1]} : vector<8x128xf32> to vector<8x32xf32>
    %235 = vector.extract_strided_slice %232 {offsets = [0, 64], sizes = [8, 32], strides = [1, 1]} : vector<8x128xf32> to vector<8x32xf32>
    %236 = vector.extract_strided_slice %231 {offsets = [0, 96], sizes = [8, 32], strides = [1, 1]} : vector<8x128xf32> to vector<8x32xf32>
    %237 = arith.mulf %234, %193 : vector<8x32xf32>
    %238 = arith.mulf %233, %235 : vector<8x32xf32>
    %239 = arith.addf %237, %238 : vector<8x32xf32>
    %240 = math.tanh %239 : vector<8x32xf32>
    %241 = arith.mulf %236, %240 : vector<8x32xf32>
    %c5_i32 = arith.constant 5 : i32
    %242 = arith.truncf %218 : vector<8x32xf32> to vector<8x32xbf16>
    %c8_i32_75 = arith.constant 8 : i32
    %243 = arith.muli %c5_i32, %c8_i32_75 : i32
    %244 = tpu.assume_multiple %243, 8 : i32
    %245 = arith.index_cast %244 : i32 to index
    %c0_76 = arith.constant 0 : index
    %246 = vector.load %arg10[%245, %c0_76] : memref<64x128xf32, #tpu.memory_space<vmem>>, vector<8x128xf32>
    %c0_77 = arith.constant 0 : index
    %c0_78 = arith.constant 0 : index
    %247 = vector.load %arg2[%c0_77, %c0_78] : memref<32x128xbf16, #tpu.memory_space<vmem>>, vector<32x128xbf16>
    %cst_79 = arith.constant dense<0.000000e+00> : vector<8x128xf32>
    %248 = tpu.matmul %242, %247, %cst_79 {dimension_numbers = #tpu.dot_dimension_numbers<[1], [0], [0], [1], [0, 0, 1, 1], [], []>} : vector<8x32xbf16>, vector<32x128xbf16>, vector<8x128xf32> -> vector<8x128xf32>
    %249 = arith.addf %246, %248 : vector<8x128xf32>
    %250 = arith.negf %249 : vector<8x128xf32>
    %251 = math.exp %250 : vector<8x128xf32>
    %cst_80 = arith.constant 1.000000e+00 : f32
    %252 = vector.broadcast %cst_80 : f32 to vector<8x128xf32>
    %253 = arith.addf %252, %251 : vector<8x128xf32>
    %254 = arith.divf %252, %253 : vector<8x128xf32>
    %255 = math.tanh %249 : vector<8x128xf32>
    %256 = vector.extract_strided_slice %254 {offsets = [0, 0], sizes = [8, 32], strides = [1, 1]} : vector<8x128xf32> to vector<8x32xf32>
    %257 = vector.extract_strided_slice %254 {offsets = [0, 32], sizes = [8, 32], strides = [1, 1]} : vector<8x128xf32> to vector<8x32xf32>
    %258 = vector.extract_strided_slice %255 {offsets = [0, 64], sizes = [8, 32], strides = [1, 1]} : vector<8x128xf32> to vector<8x32xf32>
    %259 = vector.extract_strided_slice %254 {offsets = [0, 96], sizes = [8, 32], strides = [1, 1]} : vector<8x128xf32> to vector<8x32xf32>
    %260 = arith.mulf %257, %216 : vector<8x32xf32>
    %261 = arith.mulf %256, %258 : vector<8x32xf32>
    %262 = arith.addf %260, %261 : vector<8x32xf32>
    %263 = math.tanh %262 : vector<8x32xf32>
    %264 = arith.mulf %259, %263 : vector<8x32xf32>
    %265 = arith.truncf %264 : vector<8x32xf32> to vector<8x32xbf16>
    %266 = arith.truncf %241 : vector<8x32xf32> to vector<8x32xbf16>
    %c0_81 = arith.constant 0 : index
    %c0_82 = arith.constant 0 : index
    %267 = vector.load %arg4[%c0_81, %c0_82] : memref<32x128xbf16, #tpu.memory_space<vmem>>, vector<32x128xbf16>
    %cst_83 = arith.constant dense<0.000000e+00> : vector<8x128xf32>
    %268 = tpu.matmul %265, %267, %cst_83 {dimension_numbers = #tpu.dot_dimension_numbers<[1], [0], [0], [1], [0, 0, 1, 1], [], []>} : vector<8x32xbf16>, vector<32x128xbf16>, vector<8x128xf32> -> vector<8x128xf32>
    %c0_84 = arith.constant 0 : index
    %c0_85 = arith.constant 0 : index
    %269 = vector.load %arg5[%c0_84, %c0_85] : memref<32x128xbf16, #tpu.memory_space<vmem>>, vector<32x128xbf16>
    %cst_86 = arith.constant dense<0.000000e+00> : vector<8x128xf32>
    %270 = tpu.matmul %266, %269, %cst_86 {dimension_numbers = #tpu.dot_dimension_numbers<[1], [0], [0], [1], [0, 0, 1, 1], [], []>} : vector<8x32xbf16>, vector<32x128xbf16>, vector<8x128xf32> -> vector<8x128xf32>
    %271 = arith.addf %268, %270 : vector<8x128xf32>
    %272 = arith.addf %271, %9 : vector<8x128xf32>
    %273 = arith.negf %272 : vector<8x128xf32>
    %274 = math.exp %273 : vector<8x128xf32>
    %cst_87 = arith.constant 1.000000e+00 : f32
    %275 = vector.broadcast %cst_87 : f32 to vector<8x128xf32>
    %276 = arith.addf %275, %274 : vector<8x128xf32>
    %277 = arith.divf %275, %276 : vector<8x128xf32>
    %278 = math.tanh %272 : vector<8x128xf32>
    %279 = vector.extract_strided_slice %277 {offsets = [0, 0], sizes = [8, 32], strides = [1, 1]} : vector<8x128xf32> to vector<8x32xf32>
    %280 = vector.extract_strided_slice %277 {offsets = [0, 32], sizes = [8, 32], strides = [1, 1]} : vector<8x128xf32> to vector<8x32xf32>
    %281 = vector.extract_strided_slice %278 {offsets = [0, 64], sizes = [8, 32], strides = [1, 1]} : vector<8x128xf32> to vector<8x32xf32>
    %282 = vector.extract_strided_slice %277 {offsets = [0, 96], sizes = [8, 32], strides = [1, 1]} : vector<8x128xf32> to vector<8x32xf32>
    %283 = arith.mulf %280, %239 : vector<8x32xf32>
    %284 = arith.mulf %279, %281 : vector<8x32xf32>
    %285 = arith.addf %283, %284 : vector<8x32xf32>
    %286 = math.tanh %285 : vector<8x32xf32>
    %287 = arith.mulf %282, %286 : vector<8x32xf32>
    %c6_i32 = arith.constant 6 : i32
    %288 = arith.truncf %264 : vector<8x32xf32> to vector<8x32xbf16>
    %c8_i32_88 = arith.constant 8 : i32
    %289 = arith.muli %c6_i32, %c8_i32_88 : i32
    %290 = tpu.assume_multiple %289, 8 : i32
    %291 = arith.index_cast %290 : i32 to index
    %c0_89 = arith.constant 0 : index
    %292 = vector.load %arg10[%291, %c0_89] : memref<64x128xf32, #tpu.memory_space<vmem>>, vector<8x128xf32>
    %c0_90 = arith.constant 0 : index
    %c0_91 = arith.constant 0 : index
    %293 = vector.load %arg2[%c0_90, %c0_91] : memref<32x128xbf16, #tpu.memory_space<vmem>>, vector<32x128xbf16>
    %cst_92 = arith.constant dense<0.000000e+00> : vector<8x128xf32>
    %294 = tpu.matmul %288, %293, %cst_92 {dimension_numbers = #tpu.dot_dimension_numbers<[1], [0], [0], [1], [0, 0, 1, 1], [], []>} : vector<8x32xbf16>, vector<32x128xbf16>, vector<8x128xf32> -> vector<8x128xf32>
    %295 = arith.addf %292, %294 : vector<8x128xf32>
    %296 = arith.negf %295 : vector<8x128xf32>
    %297 = math.exp %296 : vector<8x128xf32>
    %cst_93 = arith.constant 1.000000e+00 : f32
    %298 = vector.broadcast %cst_93 : f32 to vector<8x128xf32>
    %299 = arith.addf %298, %297 : vector<8x128xf32>
    %300 = arith.divf %298, %299 : vector<8x128xf32>
    %301 = math.tanh %295 : vector<8x128xf32>
    %302 = vector.extract_strided_slice %300 {offsets = [0, 0], sizes = [8, 32], strides = [1, 1]} : vector<8x128xf32> to vector<8x32xf32>
    %303 = vector.extract_strided_slice %300 {offsets = [0, 32], sizes = [8, 32], strides = [1, 1]} : vector<8x128xf32> to vector<8x32xf32>
    %304 = vector.extract_strided_slice %301 {offsets = [0, 64], sizes = [8, 32], strides = [1, 1]} : vector<8x128xf32> to vector<8x32xf32>
    %305 = vector.extract_strided_slice %300 {offsets = [0, 96], sizes = [8, 32], strides = [1, 1]} : vector<8x128xf32> to vector<8x32xf32>
    %306 = arith.mulf %303, %262 : vector<8x32xf32>
    %307 = arith.mulf %302, %304 : vector<8x32xf32>
    %308 = arith.addf %306, %307 : vector<8x32xf32>
    %309 = math.tanh %308 : vector<8x32xf32>
    %310 = arith.mulf %305, %309 : vector<8x32xf32>
    %311 = arith.truncf %310 : vector<8x32xf32> to vector<8x32xbf16>
    %312 = arith.truncf %287 : vector<8x32xf32> to vector<8x32xbf16>
    %c0_94 = arith.constant 0 : index
    %c0_95 = arith.constant 0 : index
    %313 = vector.load %arg4[%c0_94, %c0_95] : memref<32x128xbf16, #tpu.memory_space<vmem>>, vector<32x128xbf16>
    %cst_96 = arith.constant dense<0.000000e+00> : vector<8x128xf32>
    %314 = tpu.matmul %311, %313, %cst_96 {dimension_numbers = #tpu.dot_dimension_numbers<[1], [0], [0], [1], [0, 0, 1, 1], [], []>} : vector<8x32xbf16>, vector<32x128xbf16>, vector<8x128xf32> -> vector<8x128xf32>
    %c0_97 = arith.constant 0 : index
    %c0_98 = arith.constant 0 : index
    %315 = vector.load %arg5[%c0_97, %c0_98] : memref<32x128xbf16, #tpu.memory_space<vmem>>, vector<32x128xbf16>
    %cst_99 = arith.constant dense<0.000000e+00> : vector<8x128xf32>
    %316 = tpu.matmul %312, %315, %cst_99 {dimension_numbers = #tpu.dot_dimension_numbers<[1], [0], [0], [1], [0, 0, 1, 1], [], []>} : vector<8x32xbf16>, vector<32x128xbf16>, vector<8x128xf32> -> vector<8x128xf32>
    %317 = arith.addf %314, %316 : vector<8x128xf32>
    %318 = arith.addf %317, %9 : vector<8x128xf32>
    %319 = arith.negf %318 : vector<8x128xf32>
    %320 = math.exp %319 : vector<8x128xf32>
    %cst_100 = arith.constant 1.000000e+00 : f32
    %321 = vector.broadcast %cst_100 : f32 to vector<8x128xf32>
    %322 = arith.addf %321, %320 : vector<8x128xf32>
    %323 = arith.divf %321, %322 : vector<8x128xf32>
    %324 = math.tanh %318 : vector<8x128xf32>
    %325 = vector.extract_strided_slice %323 {offsets = [0, 0], sizes = [8, 32], strides = [1, 1]} : vector<8x128xf32> to vector<8x32xf32>
    %326 = vector.extract_strided_slice %323 {offsets = [0, 32], sizes = [8, 32], strides = [1, 1]} : vector<8x128xf32> to vector<8x32xf32>
    %327 = vector.extract_strided_slice %324 {offsets = [0, 64], sizes = [8, 32], strides = [1, 1]} : vector<8x128xf32> to vector<8x32xf32>
    %328 = vector.extract_strided_slice %323 {offsets = [0, 96], sizes = [8, 32], strides = [1, 1]} : vector<8x128xf32> to vector<8x32xf32>
    %329 = arith.mulf %326, %285 : vector<8x32xf32>
    %330 = arith.mulf %325, %327 : vector<8x32xf32>
    %331 = arith.addf %329, %330 : vector<8x32xf32>
    %332 = math.tanh %331 : vector<8x32xf32>
    %333 = arith.mulf %328, %332 : vector<8x32xf32>
    %c7_i32 = arith.constant 7 : i32
    %334 = arith.truncf %310 : vector<8x32xf32> to vector<8x32xbf16>
    %c8_i32_101 = arith.constant 8 : i32
    %335 = arith.muli %c7_i32, %c8_i32_101 : i32
    %336 = tpu.assume_multiple %335, 8 : i32
    %337 = arith.index_cast %336 : i32 to index
    %c0_102 = arith.constant 0 : index
    %338 = vector.load %arg10[%337, %c0_102] : memref<64x128xf32, #tpu.memory_space<vmem>>, vector<8x128xf32>
    %c0_103 = arith.constant 0 : index
    %c0_104 = arith.constant 0 : index
    %339 = vector.load %arg2[%c0_103, %c0_104] : memref<32x128xbf16, #tpu.memory_space<vmem>>, vector<32x128xbf16>
    %cst_105 = arith.constant dense<0.000000e+00> : vector<8x128xf32>
    %340 = tpu.matmul %334, %339, %cst_105 {dimension_numbers = #tpu.dot_dimension_numbers<[1], [0], [0], [1], [0, 0, 1, 1], [], []>} : vector<8x32xbf16>, vector<32x128xbf16>, vector<8x128xf32> -> vector<8x128xf32>
    %341 = arith.addf %338, %340 : vector<8x128xf32>
    %342 = arith.negf %341 : vector<8x128xf32>
    %343 = math.exp %342 : vector<8x128xf32>
    %cst_106 = arith.constant 1.000000e+00 : f32
    %344 = vector.broadcast %cst_106 : f32 to vector<8x128xf32>
    %345 = arith.addf %344, %343 : vector<8x128xf32>
    %346 = arith.divf %344, %345 : vector<8x128xf32>
    %347 = math.tanh %341 : vector<8x128xf32>
    %348 = vector.extract_strided_slice %346 {offsets = [0, 0], sizes = [8, 32], strides = [1, 1]} : vector<8x128xf32> to vector<8x32xf32>
    %349 = vector.extract_strided_slice %346 {offsets = [0, 32], sizes = [8, 32], strides = [1, 1]} : vector<8x128xf32> to vector<8x32xf32>
    %350 = vector.extract_strided_slice %347 {offsets = [0, 64], sizes = [8, 32], strides = [1, 1]} : vector<8x128xf32> to vector<8x32xf32>
    %351 = vector.extract_strided_slice %346 {offsets = [0, 96], sizes = [8, 32], strides = [1, 1]} : vector<8x128xf32> to vector<8x32xf32>
    %352 = arith.mulf %349, %308 : vector<8x32xf32>
    %353 = arith.mulf %348, %350 : vector<8x32xf32>
    %354 = arith.addf %352, %353 : vector<8x32xf32>
    %355 = math.tanh %354 : vector<8x32xf32>
    %356 = arith.mulf %351, %355 : vector<8x32xf32>
    %357 = arith.truncf %356 : vector<8x32xf32> to vector<8x32xbf16>
    %358 = arith.truncf %333 : vector<8x32xf32> to vector<8x32xbf16>
    %c0_107 = arith.constant 0 : index
    %c0_108 = arith.constant 0 : index
    %359 = vector.load %arg4[%c0_107, %c0_108] : memref<32x128xbf16, #tpu.memory_space<vmem>>, vector<32x128xbf16>
    %cst_109 = arith.constant dense<0.000000e+00> : vector<8x128xf32>
    %360 = tpu.matmul %357, %359, %cst_109 {dimension_numbers = #tpu.dot_dimension_numbers<[1], [0], [0], [1], [0, 0, 1, 1], [], []>} : vector<8x32xbf16>, vector<32x128xbf16>, vector<8x128xf32> -> vector<8x128xf32>
    %c0_110 = arith.constant 0 : index
    %c0_111 = arith.constant 0 : index
    %361 = vector.load %arg5[%c0_110, %c0_111] : memref<32x128xbf16, #tpu.memory_space<vmem>>, vector<32x128xbf16>
    %cst_112 = arith.constant dense<0.000000e+00> : vector<8x128xf32>
    %362 = tpu.matmul %358, %361, %cst_112 {dimension_numbers = #tpu.dot_dimension_numbers<[1], [0], [0], [1], [0, 0, 1, 1], [], []>} : vector<8x32xbf16>, vector<32x128xbf16>, vector<8x128xf32> -> vector<8x128xf32>
    %363 = arith.addf %360, %362 : vector<8x128xf32>
    %364 = arith.addf %363, %9 : vector<8x128xf32>
    %365 = arith.negf %364 : vector<8x128xf32>
    %366 = math.exp %365 : vector<8x128xf32>
    %cst_113 = arith.constant 1.000000e+00 : f32
    %367 = vector.broadcast %cst_113 : f32 to vector<8x128xf32>
    %368 = arith.addf %367, %366 : vector<8x128xf32>
    %369 = arith.divf %367, %368 : vector<8x128xf32>
    %370 = math.tanh %364 : vector<8x128xf32>
    %371 = vector.extract_strided_slice %369 {offsets = [0, 0], sizes = [8, 32], strides = [1, 1]} : vector<8x128xf32> to vector<8x32xf32>
    %372 = vector.extract_strided_slice %369 {offsets = [0, 32], sizes = [8, 32], strides = [1, 1]} : vector<8x128xf32> to vector<8x32xf32>
    %373 = vector.extract_strided_slice %370 {offsets = [0, 64], sizes = [8, 32], strides = [1, 1]} : vector<8x128xf32> to vector<8x32xf32>
    %374 = vector.extract_strided_slice %369 {offsets = [0, 96], sizes = [8, 32], strides = [1, 1]} : vector<8x128xf32> to vector<8x32xf32>
    %375 = arith.mulf %372, %331 : vector<8x32xf32>
    %376 = arith.mulf %371, %373 : vector<8x32xf32>
    %377 = arith.addf %375, %376 : vector<8x32xf32>
    %378 = math.tanh %377 : vector<8x32xf32>
    %379 = arith.mulf %374, %378 : vector<8x32xf32>
    %c8_i32_114 = arith.constant 8 : i32
    %380 = arith.truncf %379 : vector<8x32xf32> to vector<8x32xbf16>
    %c0_115 = arith.constant 0 : index
    %c0_116 = arith.constant 0 : index
    %381 = vector.load %arg7[%c0_115, %c0_116] : memref<32x128xbf16, #tpu.memory_space<vmem>>, vector<32x128xbf16>
    %cst_117 = arith.constant dense<0.000000e+00> : vector<8x128xf32>
    %382 = tpu.matmul %380, %381, %cst_117 {dimension_numbers = #tpu.dot_dimension_numbers<[1], [0], [0], [1], [0, 0, 1, 1], [], []>} : vector<8x32xbf16>, vector<32x128xbf16>, vector<8x128xf32> -> vector<8x128xf32>
    %c0_118 = arith.constant 0 : index
    %c0_119 = arith.constant 0 : index
    %383 = vector.load %arg8[%c0_118, %c0_119] : memref<1x128xf32, #tpu.memory_space<vmem>>, vector<1x128xf32>
    %384 = vector.broadcast %383 : vector<1x128xf32> to vector<8x128xf32>
    %385 = arith.addf %382, %384 : vector<8x128xf32>
    %c0_120 = arith.constant 0 : index
    %c0_121 = arith.constant 0 : index
    %386 = vector.load %arg9[%c0_120, %c0_121] : memref<8x128xf32, #tpu.memory_space<vmem>>, vector<8x128xf32>
    tpu.vector_store %arg9[%c0_120, %c0_121], %385 {strides = array<i32>} : memref<8x128xf32, #tpu.memory_space<vmem>>, vector<8x128xf32>,
    return
  }
}

</mosaic_0001>

<bundles_post_ra>
// kernel: tpu_custom_call.1
= control target key start
LH: loop header
LB: loop body
LE: loop exit
PB: predicated region body
PF: predicated region fallthrough
CT: control target
= control target key end

     0   :  { %14 = vsyncpa [#allocation4], 0  ;;  %s2864_s0 = inlined_call_operand.vmem [shape: bf16[64,32], index: 0, kind: input, shape index: {}]   ;;  %s2865_s1 = inlined_call_operand.vmem [shape: bf16[32,128], index: 1, kind: input, shape index: {}]   ;;  %s2866_s2 = inlined_call_operand.vmem [shape: bf16[32,128], index: 2, kind: input, shape index: {}]   ;;  %s2867_s3 = inlined_call_operand.vmem [shape: f32[1,128], index: 3, kind: input, shape index: {}]   ;;  %s2868_s4 = inlined_call_operand.vmem [shape: bf16[32,128], index: 4, kind: input, shape index: {}]   ;;  %s2869_s5 = inlined_call_operand.hbm [shape: bf16[32,128], index: 5, kind: input, shape index: {}]   ;;  %s2870_s6 = inlined_call_operand.vmem [shape: f32[1,128], index: 6, kind: input, shape index: {}]   ;;  %s2871_s7 = inlined_call_operand.hbm [shape: bf16[32,128], index: 7, kind: input, shape index: {}]   ;;  %s2872_s8 = inlined_call_operand.vmem [shape: f32[1,128], index: 8, kind: input, shape index: {}]   ;;  %s2873_s9 = inlined_call_operand.hbm [shape: f32[8,128], index: 9, kind: output, shape index: {}]  }
   0x1   :  { %15 = vsyncpa [#allocation7], 0 }
   0x2   :  { %16 = vsyncpa [#allocation5], 0  ;;  %s2402_s30 = smov [#allocation3]  }
   0x3   :  { %s32_s10 = sshll.u32 %s2402_s30, 4  ;;  %s33_s10 = int_to_ptr.vmem [resolvable:$true] %s32_s10 }
   0x4   :  { %s2344_s11 = scalar_lea.vmem %s33_s10, 256  ;;  %p2349_p1 = scmp.lt.s32.totalorder %s33_s10, %s33_s10 }
   0x5   :  { %p2345_p0 = scmp.ne.s32.totalorder %s33_s10, %s2344_s11  ;;  %p2350_p2 = scmp.lt.s32.totalorder %s2344_s11, %s2344_s11 }
   0x7   :  { %p2351_p3 = por %p2350_p2, %p2349_p1 }
   0x9   :  { %p2352_p4 = pnand %p2351_p3, %p2345_p0 }
   0xb   :  { %2355 = shalt.err (!%p2352_p4)
}
   0xc   :  { %s2403_s12 = smov 64   ;;  %s2404_s13 = smov 4  }
   0xd   :  { %38 = dma.hbm_to_vmem [thread:$0]  %s2869_s5, 256, %s33_s10, [#allocation4], %s2403_s12, %s2403_s12, %s2404_s13  }
   0xe   :  { %s2405_s16 = smov [#allocation6]  }
   0xf   :  { %s46_s17 = sshll.u32 %s2405_s16, 4  ;;  %s47_s17 = int_to_ptr.vmem [resolvable:$true] %s46_s17 }
  0x10   :  { %s2364_s18 = scalar_lea.vmem %s47_s17, 256  ;;  %p2369_p6 = scmp.lt.s32.totalorder %s47_s17, %s47_s17 }
  0x11   :  { %p2365_p5 = scmp.ne.s32.totalorder %s47_s17, %s2364_s18  ;;  %p2370_p7 = scmp.lt.s32.totalorder %s2364_s18, %s2364_s18 }
  0x13   :  { %p2371_p8 = por %p2370_p7, %p2369_p6 }
  0x15   :  { %p2372_p9 = pnand %p2371_p8, %p2365_p5 }
  0x17   :  { %2375 = shalt.err (!%p2372_p9)
}
  0x18   :  { %52 = dma.hbm_to_vmem [thread:$0]  %s2871_s7, 256, %s47_s17, [#allocation7], %s2403_s12, %s2403_s12, %s2404_s13  }
  0x19   :  { %2396 = dma.done.wait [#allocation4], 256  }
  0x1a   :  { %2397 = vsyncadd [#allocation4], 4294967040 }
  0x1b   :  { %2398 = dma.done.wait [#allocation7], 256  }
  0x1c   :  { %2399 = vsyncadd [#allocation7], 4294967040  ;;  %v2406_v0 = vmov 0.0   ;;  %vm2407_vm0 = vmmov 0   ;;  %v2186_v1 = vld [vmem:[%s2865_s1 + $0x8] sm:$0xff]   ;;  %v2188_v3 = vld [vmem:[%s2865_s1] sm:$0xff]  }
  0x1d   :  { %1977 = vmatprep.subr.bf16.mxu1 %v2406_v0  ;;  %1981 = vmatprep.mubr.msk.bf16.mxu1 %vm2407_vm0, %v2406_v0  ;;  %v2480_v2 = vld [vmem:[%s2866_s2 + $0x8] sm:$0xff]   ;;  %v2489_v4 = vld [vmem:[%s2866_s2] sm:$0xff]   ;;  %vm113_vm1 = vcmask 261120   ;;  %v2408_v7 = vmov 0   ;;  %s2409_s11 = smov 32   ;;  %v2194_v29 = vld [vmem:[%s2864_s0 + $0x10] sm:$0xff]  }
  0x1e   :  { %1965 = vmatprep.subr.bf16.mxu0 %v2186_v1  ;;  %1978 = vmatpush3.bf16.msra.mxu1 %v2480_v2  ;;  %v2190_v5 = vld [vmem:[%s2864_s0] sm:$0xff]   ;;  %v2191_v6 = vld [vmem:[%s2864_s0 + $0x8] sm:$0xff]   ;;  %v2196_v30 = vld [vmem:[%s2864_s0 + $0x18] sm:$0xff]   ;;  %s2410_s30 = smov [#allocation8]  }
  0x1f   :  { %1966 = vmatpush3.bf16.msra.mxu0 %v2186_v1  ;;  %1979 = vmatprep.subr.bf16.mxu1 %v2406_v0  ;;  %v2510_v10 = vld [vmem:[%s2867_s3] ss:$0 sm:$0xff]  ;;  %v2518_v27 = vld [vmem:[#allocation3 + $0x8] sm:$0xff]   ;;  %s1814_s1 = sshll.u32 %s2410_s30, 4  ;;  %s1815_s1 = int_to_ptr.vmem [resolvable:$true] %s1814_s1 }
  0x20   :  { %1967 = vmatprep.subr.bf16.mxu0 %v2188_v3  ;;  %1969 = vmatprep.mubr.msk.bf16.mxu0 %vm113_vm1, %v2190_v5  ;;  %v2523_v28 = vld [vmem:[%s2868_s4 + $0x8] sm:$0xff]   ;;  %v2533_v31 = vld [vmem:[#allocation3] sm:$0xff]   ;;  %p2381_p11 = scmp.lt.s32.totalorder %s1815_s1, %s1815_s1 }
  0x21   :  { %v2538_v32 = vld [vmem:[%s2868_s4] sm:$0xff]  }
  0x22   :  { %1980 = vmatpush3.bf16.msra.mxu1 %v2489_v4  ;;  %v2586_v49 = vld [vmem:[%s2870_s6] ss:$0 sm:$0xff] }
  0x23   :  { %1968 = vmatpush3.bf16.msra.mxu0 %v2188_v3  ;;  %1985 = vmatprep.subr.bf16.mxu1 %v2406_v0 }
  0x24   :  { %1993 = vmatprep.subr.bf16.mxu0 %v2406_v0 }
  0x25   :  { %1982 = vmatmul.mubr.bf16.vlgmr.msra.gmra.mxu1 %v2408_v7 }
  0x26   :  { %1970 = vmatmul.mubr.msk.bf16.vlgmr.msra.gmra.mxu0 %vm113_vm1, %v2191_v6  ;;  %1989 = vmatprep.mubr.msk.bf16.mxu1 %vm2407_vm0, %v2406_v0 }
  0x27   :  { %1986 = vmatpush3.bf16.msra.mxu1 %v2518_v27  ;;  %1994 = vmatpush3.bf16.msra.mxu0 %v2523_v28 }
  0x28   :  { %1987 = vmatprep.subr.bf16.mxu1 %v2406_v0  ;;  %1973 = vmatprep.mubr.msk.bf16.mxu0 %vm113_vm1, %v2194_v29 }
  0x29   :  { %1995 = vmatprep.subr.bf16.mxu0 %v2406_v0 }
  0x2b   :  { %1988 = vmatpush3.bf16.msra.mxu1 %v2533_v31  ;;  %1996 = vmatpush3.bf16.msra.mxu0 %v2538_v32 }
  0x2c   :  { %2001 = vmatprep.subr.bf16.mxu1 %v2406_v0  ;;  %2009 = vmatprep.subr.bf16.mxu0 %v2406_v0 }
  0x2e   :  { %1974 = vmatmul.mubr.msk.bf16.gmra.mxu0 %vm113_vm1, %v2196_v30  ;;  %1990 = vmatmul.mubr.bf16.vlgmr.msra.gmra.mxu1 %v2408_v7 }
  0x2f   :  { %1997 = vmatprep.mubr.msk.bf16.mxu0 %vm2407_vm0, %v2406_v0  ;;  %2002 = vmatpush3.bf16.msra.mxu1 %v2480_v2 }
  0x30   :  { %2005 = vmatprep.mubr.msk.bf16.mxu1 %vm2407_vm0, %v2406_v0  ;;  %2003 = vmatprep.subr.bf16.mxu1 %v2406_v0 }
  0x33   :  { %2004 = vmatpush3.bf16.msra.mxu1 %v2489_v4 }
  0x34   :  { %2017 = vmatprep.subr.bf16.mxu1 %v2406_v0 }
  0xe5   :  { %v260_v8 = vpop.f32.mrf.mxu1 }
  0xe6   :  { %v2505_v9 = vpop.f32.mrf.mxu0 }
  0xe7   :  { %v1983_v11 = vpop.f32.mrf.mxu1 }
  0xe8   :  { %v160_v12 = vpop.f32.mrf.mxu0 }
  0xe9   :  { %v161_v13 = vadd.f32 %v2510_v10, %v160_v12  ;;  %v263_v14 = vpop.f32.mrf.mxu1 }
  0xea   :  { %v2572_v42 = vpop.f32.mrf.mxu0 }
  0xeb   :  { %v266_v15 = vadd.f32 %v260_v8, %v161_v13  ;;  %v1984_v16 = vpop.f32.mrf.mxu1 }
  0xec   :  { %v163_v43 = vpop.f32.mrf.mxu0 }
  0xed   :  { %2200 = vtanh.f32 %v266_v15  ;;  %v1838_v18 = vmul.f32 -1.442695, %v266_v15  ;;  %v164_v48 = vadd.f32 %v2510_v10, %v163_v43 }
  0xee   :  { %v346_v37 = vpop.f32.mrf.mxu1  ;;  %v2574_v44 = vpop.f32.mrf.mxu0 }
  0xef   :  { %2202 = vpow2.f32 %v1838_v18 }
  0xf0   :  { %v1991_v38 = vpop.f32.mrf.mxu1  ;;  %v2576_v45 = vpop.f32.mrf.mxu0 }
  0xf2   :  { %v349_v39 = vpop.f32.mrf.mxu1  ;;  %v2578_v46 = vpop.f32.mrf.mxu0 }
  0xf4   :  { %v1992_v40 = vpop.f32.mrf.mxu1  ;;  %v2580_v47 = vpop.f32.mrf.mxu0 }
  0xfa   :  { %v2201_v17 = vpop.eup %2200 }
  0xfb   :  { %276 = vrot.lane.b32.xlu0 %v2201_v17, %s2403_s12 }
  0xfc   :  { %v2203_v19 = vpop.eup %2202 }
  0xfd   :  { %v270_v20 = vadd.f32 1.0, %v2203_v19 }
  0xff   :  { %2204 = vrcp.f32 %v270_v20 }
 0x10c   :  { %v2205_v21 = vpop.eup %2204 }
 0x10d   :  { %v274_v24 = vmul.f32 0.0, %v2205_v21 }
 0x16d   :  { %v277_v22 = vpop.permute.xlu0 %276 }
 0x16e   :  { %v279_v23 = vmul.f32 %v2205_v21, %v277_v22 }
 0x170   :  { %281 = vrot.lane.b32.xlu0 %v279_v23, %s2409_s11 }
 0x1e2   :  { %v282_v25 = vpop.permute.xlu0 %281 }
 0x1e3   :  { %v2515_v26 = vadd.f32 %v282_v25, %v274_v24 }
 0x1e5   :  { %2206 = vtanh.f32 %v2515_v26 }
 0x1f2   :  { %v2207_v33 = vpop.eup %2206 }
 0x1f3   :  { %287 = vrot.lane.b32.xlu1 %v2207_v33, %s2403_s12 }
 0x265   :  { %v288_v34 = vpop.permute.xlu1 %287 }
 0x266   :  { %v290_v35 = vmul.f32 %v2205_v21, %v288_v34 }
 0x268   :  { %v291_v36 = vpack.c.bf16 %v290_v35, %v290_v35 }
 0x26a   :  { %353 = vrot.lane.b32.xlu1 %v291_v36, %s2409_s11 }
 0x2dc   :  { %v354_v41 = vpop.permute.xlu1 %353 }
 0x2dd   :  { %1998 = vmatmul.mubr.msk.bf16.vlgmr.msra.gmra.mxu0 %vm113_vm1, %v354_v41  ;;  %2006 = vmatmul.mubr.msk.bf16.vlgmr.msra.gmra.mxu1 %vm113_vm1, %v354_v41 }
 0x2de   :  { %2018 = vmatpush3.bf16.msra.mxu1 %v2523_v28  ;;  %2010 = vmatpush3.bf16.msra.mxu0 %v2518_v27 }
 0x2df   :  { %2019 = vmatprep.subr.bf16.mxu1 %v2406_v0  ;;  %2011 = vmatprep.subr.bf16.mxu0 %v2406_v0 }
 0x2e0   :  { %2021 = vmatprep.mubr.msk.bf16.mxu1 %vm2407_vm0, %v2406_v0  ;;  %2013 = vmatprep.mubr.msk.bf16.mxu0 %vm2407_vm0, %v2406_v0 }
 0x2e2   :  { %2020 = vmatpush3.bf16.msra.mxu1 %v2538_v32  ;;  %2012 = vmatpush3.bf16.msra.mxu0 %v2533_v31 }
 0x2e3   :  { %2025 = vmatprep.subr.bf16.mxu0 %v2406_v0  ;;  %2033 = vmatprep.subr.bf16.mxu1 %v2406_v0 }
 0x39d   :  { %v404_v50 = vpop.f32.mrf.mxu0  ;;  %v471_v51 = vpop.f32.mrf.mxu1 }
 0x39e   :  { %v405_v52 = vadd.f32 %v404_v50, %v346_v37  ;;  %v477_v53 = vadd.f32 %v471_v51, %v164_v48 }
 0x39f   :  { %v1999_v54 = vpop.f32.mrf.mxu0  ;;  %v2007_v55 = vpop.f32.mrf.mxu1 }
 0x3a0   :  { %v410_v56 = vadd.f32 %v2586_v49, %v405_v52  ;;  %2208 = vtanh.f32 %v477_v53  ;;  %v1846_v63 = vmul.f32 -1.442695, %v477_v53  ;;  %v169_v52 = vadd.f32 %v2505_v9, %v2510_v10 }
 0x3a1   :  { %v407_v57 = vpop.f32.mrf.mxu0  ;;  %v474_v58 = vpop.f32.mrf.mxu1 }
 0x3a2   :  { %2210 = vtanh.f32 %v410_v56  ;;  %v1844_v1 = vmul.f32 -1.442695, %v410_v56 }
 0x3a3   :  { %v2000_v59 = vpop.f32.mrf.mxu0  ;;  %v2008_v60 = vpop.f32.mrf.mxu1  ;;  %2212 = vpow2.f32 %v1846_v63 }
 0x3a4   :  { %2214 = vpow2.f32 %v1844_v1 }
 0x3ad   :  { %v2209_v61 = vpop.eup %2208 }
 0x3ae   :  { %487 = vrot.lane.b32.xlu1 %v2209_v61, %s2403_s12 }
 0x3af   :  { %v2211_v62 = vpop.eup %2210 }
 0x3b0   :  { %420 = vrot.lane.b32.xlu0 %v2211_v62, %s2403_s12  ;;  %v2213_v3 = vpop.eup %2212 }
 0x3b1   :  { %v2215_v5 = vpop.eup %2214  ;;  %v481_v6 = vadd.f32 1.0, %v2213_v3 }
 0x3b2   :  { %v414_v7 = vadd.f32 1.0, %v2215_v5 }
 0x3b3   :  { %2216 = vrcp.f32 %v481_v6 }
 0x3b4   :  { %2218 = vrcp.f32 %v414_v7 }
 0x3c0   :  { %v2217_v8 = vpop.eup %2216 }
 0x3c1   :  { %v2219_v13 = vpop.eup %2218  ;;  %v485_v16 = vmul.f32 %v2217_v8, %v2515_v26 }
 0x3c2   :  { %v418_v19 = vmul.f32 0.0, %v2219_v13 }
 0x420   :  { %v488_v11 = vpop.permute.xlu1 %487 }
 0x421   :  { %v490_v12 = vmul.f32 %v2217_v8, %v488_v11 }
 0x422   :  { %v421_v14 = vpop.permute.xlu0 %420 }
 0x423   :  { %v423_v15 = vmul.f32 %v2219_v13, %v421_v14  ;;  %492 = vrot.lane.b32.xlu1 %v490_v12, %s2409_s11 }
 0x425   :  { %425 = vrot.lane.b32.xlu0 %v423_v15, %s2409_s11 }
 0x495   :  { %v493_v17 = vpop.permute.xlu1 %492 }
 0x496   :  { %v2594_v18 = vadd.f32 %v493_v17, %v485_v16 }
 0x497   :  { %v426_v20 = vpop.permute.xlu0 %425 }
 0x498   :  { %2220 = vtanh.f32 %v2594_v18  ;;  %v2597_v21 = vadd.f32 %v426_v20, %v418_v19 }
 0x49a   :  { %2222 = vtanh.f32 %v2597_v21 }
 0x4a5   :  { %v2221_v22 = vpop.eup %2220 }
 0x4a6   :  { %498 = vrot.lane.b32.xlu1 %v2221_v22, %s2403_s12 }
 0x4a7   :  { %v2223_v23 = vpop.eup %2222 }
 0x4a8   :  { %431 = vrot.lane.b32.xlu0 %v2223_v23, %s2403_s12 }
 0x518   :  { %v499_v24 = vpop.permute.xlu1 %498 }
 0x519   :  { %v501_v25 = vmul.f32 %v2217_v8, %v499_v24 }
 0x51a   :  { %v432_v26 = vpop.permute.xlu0 %431 }
 0x51b   :  { %v502_v29 = vpack.c.bf16 %v501_v25, %v501_v25  ;;  %v434_v30 = vmul.f32 %v2219_v13, %v432_v26 }
 0x51d   :  { %v503_v33 = vpack.c.bf16 %v434_v30, %v434_v30  ;;  %551 = vrot.lane.b32.xlu1 %v502_v29, %s2409_s11 }
 0x51f   :  { %505 = vrot.lane.b32.xlu0 %v503_v33, %s2409_s11 }
 0x58f   :  { %v552_v34 = vpop.permute.xlu1 %551 }
 0x590   :  { %2022 = vmatmul.mubr.msk.bf16.vlgmr.msra.gmra.mxu1 %vm113_vm1, %v552_v34 }
 0x591   :  { %v506_v35 = vpop.permute.xlu0 %505  ;;  %2034 = vmatpush3.bf16.msra.mxu1 %v2518_v27  ;;  %2037 = vmatprep.mubr.msk.bf16.mxu1 %vm2407_vm0, %v2406_v0 }
 0x592   :  { %2014 = vmatmul.mubr.msk.bf16.vlgmr.msra.gmra.mxu0 %vm113_vm1, %v506_v35  ;;  %2035 = vmatprep.subr.bf16.mxu1 %v2406_v0 }
 0x593   :  { %2026 = vmatpush3.bf16.msra.mxu0 %v2480_v2  ;;  %2029 = vmatprep.mubr.msk.bf16.mxu0 %vm2407_vm0, %v2406_v0 }
 0x594   :  { %2027 = vmatprep.subr.bf16.mxu0 %v2406_v0 }
 0x595   :  { %2036 = vmatpush3.bf16.msra.mxu1 %v2533_v31 }
 0x596   :  { %2049 = vmatprep.subr.bf16.mxu1 %v2406_v0 }
 0x597   :  { %2028 = vmatpush3.bf16.msra.mxu0 %v2489_v4 }
 0x598   :  { %2041 = vmatprep.subr.bf16.mxu0 %v2406_v0 }
 0x59a   :  { %2030 = vmatmul.mubr.msk.bf16.vlgmr.msra.gmra.mxu0 %vm113_vm1, %v552_v34 }
 0x59b   :  { %2042 = vmatpush3.bf16.msra.mxu0 %v2523_v28  ;;  %2045 = vmatprep.mubr.msk.bf16.mxu0 %vm2407_vm0, %v2406_v0 }
 0x59c   :  { %2043 = vmatprep.subr.bf16.mxu0 %v2406_v0 }
 0x59f   :  { %2044 = vmatpush3.bf16.msra.mxu0 %v2538_v32 }
 0x5a0   :  { %2057 = vmatprep.subr.bf16.mxu0 %v2406_v0 }
 0x650   :  { %v590_v36 = vpop.f32.mrf.mxu1 }
 0x652   :  { %v544_v37 = vpop.f32.mrf.mxu0  ;;  %v2023_v38 = vpop.f32.mrf.mxu1 }
 0x653   :  { %v591_v39 = vadd.f32 %v590_v36, %v544_v37  ;;  %v172_v37 = vadd.f32 %v2572_v42, %v2510_v10 }
 0x654   :  { %v2015_v40 = vpop.f32.mrf.mxu0  ;;  %v593_v41 = vpop.f32.mrf.mxu1 }
 0x655   :  { %v596_v43 = vadd.f32 %v2586_v49, %v591_v39 }
 0x656   :  { %v547_v48 = vpop.f32.mrf.mxu0  ;;  %v2024_v50 = vpop.f32.mrf.mxu1 }
 0x657   :  { %2224 = vtanh.f32 %v596_v43  ;;  %v1849_v60 = vmul.f32 -1.442695, %v596_v43 }
 0x658   :  { %v2016_v51 = vpop.f32.mrf.mxu0 }
 0x65a   :  { %v657_v53 = vpop.f32.mrf.mxu0 }
 0x65b   :  { %v663_v54 = vadd.f32 %v657_v53, %v169_v52 }
 0x65c   :  { %v2031_v55 = vpop.f32.mrf.mxu0 }
 0x65d   :  { %2226 = vtanh.f32 %v663_v54  ;;  %v1851_v61 = vmul.f32 -1.442695, %v663_v54 }
 0x65e   :  { %v660_v56 = vpop.f32.mrf.mxu0  ;;  %2228 = vpow2.f32 %v1849_v60 }
 0x65f   :  { %2230 = vpow2.f32 %v1851_v61 }
 0x660   :  { %v2032_v57 = vpop.f32.mrf.mxu0 }
 0x664   :  { %v2225_v58 = vpop.eup %2224 }
 0x665   :  { %606 = vrot.lane.b32.xlu0 %v2225_v58, %s2403_s12 }
 0x66a   :  { %v2227_v59 = vpop.eup %2226 }
 0x66b   :  { %673 = vrot.lane.b32.xlu1 %v2227_v59, %s2403_s12  ;;  %v2229_v62 = vpop.eup %2228 }
 0x66c   :  { %v600_v63 = vadd.f32 1.0, %v2229_v62  ;;  %v2231_v1 = vpop.eup %2230 }
 0x66d   :  { %v667_v9 = vadd.f32 1.0, %v2231_v1 }
 0x66e   :  { %2232 = vrcp.f32 %v600_v63 }
 0x66f   :  { %2234 = vrcp.f32 %v667_v9 }
 0x67b   :  { %v2233_v3 = vpop.eup %2232 }
 0x67c   :  { %v2235_v7 = vpop.eup %2234  ;;  %v604_v12 = vmul.f32 %v2233_v3, %v2597_v21 }
 0x67d   :  { %v671_v15 = vmul.f32 %v2235_v7, %v2594_v18 }
 0x6d7   :  { %v607_v5 = vpop.permute.xlu0 %606 }
 0x6d8   :  { %v609_v6 = vmul.f32 %v2233_v3, %v607_v5 }
 0x6da   :  { %611 = vrot.lane.b32.xlu0 %v609_v6, %s2409_s11 }
 0x6dd   :  { %v674_v8 = vpop.permute.xlu1 %673 }
 0x6de   :  { %v676_v11 = vmul.f32 %v2235_v7, %v674_v8 }
 0x6e0   :  { %678 = vrot.lane.b32.xlu1 %v676_v11, %s2409_s11 }
 0x74c   :  { %v612_v13 = vpop.permute.xlu0 %611 }
 0x74d   :  { %v2633_v14 = vadd.f32 %v612_v13, %v604_v12 }
 0x74f   :  { %2236 = vtanh.f32 %v2633_v14 }
 0x752   :  { %v679_v16 = vpop.permute.xlu1 %678 }
 0x753   :  { %v2637_v17 = vadd.f32 %v679_v16, %v671_v15 }
 0x755   :  { %2238 = vtanh.f32 %v2637_v17 }
 0x75c   :  { %v2237_v19 = vpop.eup %2236 }
 0x75d   :  { %617 = vrot.lane.b32.xlu0 %v2237_v19, %s2403_s12 }
 0x762   :  { %v2239_v20 = vpop.eup %2238 }
 0x763   :  { %684 = vrot.lane.b32.xlu1 %v2239_v20, %s2403_s12 }
 0x7cf   :  { %v618_v22 = vpop.permute.xlu0 %617 }
 0x7d0   :  { %v620_v21 = vmul.f32 %v2233_v3, %v618_v22 }
 0x7d2   :  { %v689_v23 = vpack.c.bf16 %v620_v21, %v620_v21 }
 0x7d4   :  { %691 = vrot.lane.b32.xlu0 %v689_v23, %s2409_s11 }
 0x7d5   :  { %v685_v24 = vpop.permute.xlu1 %684 }
 0x7d6   :  { %v687_v25 = vmul.f32 %v2235_v7, %v685_v24 }
 0x7d8   :  { %v688_v26 = vpack.c.bf16 %v687_v25, %v687_v25 }
 0x7da   :  { %737 = vrot.lane.b32.xlu1 %v688_v26, %s2409_s11 }
 0x846   :  { %v692_v18 = vpop.permute.xlu0 %691 }
 0x847   :  { %2038 = vmatmul.mubr.msk.bf16.vlgmr.msra.gmra.mxu1 %vm113_vm1, %v692_v18 }
 0x848   :  { %2050 = vmatpush3.bf16.msra.mxu1 %v2480_v2  ;;  %2053 = vmatprep.mubr.msk.bf16.mxu1 %vm2407_vm0, %v2406_v0 }
 0x849   :  { %2051 = vmatprep.subr.bf16.mxu1 %v2406_v0 }
 0x84c   :  { %2052 = vmatpush3.bf16.msra.mxu1 %v2489_v4  ;;  %v738_v29 = vpop.permute.xlu1 %737 }
 0x84d   :  { %2046 = vmatmul.mubr.msk.bf16.vlgmr.msra.gmra.mxu0 %vm113_vm1, %v738_v29  ;;  %2065 = vmatprep.subr.bf16.mxu1 %v2406_v0 }
 0x84e   :  { %2058 = vmatpush3.bf16.msra.mxu0 %v2518_v27  ;;  %2061 = vmatprep.mubr.msk.bf16.mxu0 %vm2407_vm0, %v2406_v0 }
 0x84f   :  { %2054 = vmatmul.mubr.msk.bf16.vlgmr.msra.gmra.mxu1 %vm113_vm1, %v738_v29  ;;  %2059 = vmatprep.subr.bf16.mxu0 %v2406_v0 }
 0x850   :  { %2066 = vmatpush3.bf16.msra.mxu1 %v2523_v28  ;;  %2069 = vmatprep.mubr.msk.bf16.mxu1 %vm2407_vm0, %v2406_v0 }
 0x851   :  { %2067 = vmatprep.subr.bf16.mxu1 %v2406_v0 }
 0x852   :  { %2060 = vmatpush3.bf16.msra.mxu0 %v2533_v31 }
 0x853   :  { %2073 = vmatprep.subr.bf16.mxu0 %v2406_v0 }
 0x854   :  { %2068 = vmatpush3.bf16.msra.mxu1 %v2538_v32 }
 0x855   :  { %2081 = vmatprep.subr.bf16.mxu1 %v2406_v0 }
 0x907   :  { %v730_v30 = vpop.f32.mrf.mxu1 }
 0x909   :  { %v2039_v33 = vpop.f32.mrf.mxu1 }
 0x90b   :  { %v733_v34 = vpop.f32.mrf.mxu1 }
 0x90d   :  { %v2040_v35 = vpop.f32.mrf.mxu1  ;;  %v776_v36 = vpop.f32.mrf.mxu0 }
 0x90e   :  { %v777_v38 = vadd.f32 %v776_v36, %v730_v30  ;;  %v177_v36 = vadd.f32 %v2510_v10, %v2576_v45 }
 0x90f   :  { %v2047_v39 = vpop.f32.mrf.mxu0  ;;  %v843_v40 = vpop.f32.mrf.mxu1 }
 0x910   :  { %v782_v41 = vadd.f32 %v2586_v49, %v777_v38  ;;  %v849_v43 = vadd.f32 %v843_v40, %v172_v37 }
 0x911   :  { %v779_v48 = vpop.f32.mrf.mxu0  ;;  %v2055_v50 = vpop.f32.mrf.mxu1 }
 0x912   :  { %2240 = vtanh.f32 %v782_v41  ;;  %v1854_v42 = vmul.f32 -1.442695, %v782_v41  ;;  %v1856_v56 = vmul.f32 -1.442695, %v849_v43 }
 0x913   :  { %2242 = vtanh.f32 %v849_v43  ;;  %v2048_v51 = vpop.f32.mrf.mxu0  ;;  %v846_v52 = vpop.f32.mrf.mxu1 }
 0x914   :  { %2244 = vpow2.f32 %v1854_v42 }
 0x915   :  { %v2056_v53 = vpop.f32.mrf.mxu1  ;;  %2246 = vpow2.f32 %v1856_v56 }
 0x91f   :  { %v2241_v54 = vpop.eup %2240 }
 0x920   :  { %v2243_v55 = vpop.eup %2242  ;;  %792 = vrot.lane.b32.xlu0 %v2241_v54, %s2403_s12 }
 0x921   :  { %859 = vrot.lane.b32.xlu1 %v2243_v55, %s2403_s12  ;;  %v2245_v57 = vpop.eup %2244 }
 0x922   :  { %v2247_v58 = vpop.eup %2246  ;;  %v786_v59 = vadd.f32 1.0, %v2245_v57 }
 0x923   :  { %v853_v60 = vadd.f32 1.0, %v2247_v58 }
 0x924   :  { %2248 = vrcp.f32 %v786_v59 }
 0x925   :  { %2250 = vrcp.f32 %v853_v60 }
 0x931   :  { %v2249_v61 = vpop.eup %2248 }
 0x932   :  { %v2251_v63 = vpop.eup %2250  ;;  %v790_v5 = vmul.f32 %v2249_v61, %v2633_v14 }
 0x933   :  { %v857_v6 = vmul.f32 %v2251_v63, %v2637_v17 }
 0x992   :  { %v793_v62 = vpop.permute.xlu0 %792 }
 0x993   :  { %v860_v1 = vpop.permute.xlu1 %859  ;;  %v795_v9 = vmul.f32 %v2249_v61, %v793_v62 }
 0x994   :  { %v862_v3 = vmul.f32 %v2251_v63, %v860_v1 }
 0x995   :  { %797 = vrot.lane.b32.xlu0 %v795_v9, %s2409_s11 }
 0x996   :  { %864 = vrot.lane.b32.xlu1 %v862_v3, %s2409_s11 }
 0xa07   :  { %v798_v7 = vpop.permute.xlu0 %797 }
 0xa08   :  { %v865_v8 = vpop.permute.xlu1 %864  ;;  %v2674_v11 = vadd.f32 %v798_v7, %v790_v5 }
 0xa09   :  { %v2676_v12 = vadd.f32 %v865_v8, %v857_v6 }
 0xa0a   :  { %2252 = vtanh.f32 %v2674_v11 }
 0xa0b   :  { %2254 = vtanh.f32 %v2676_v12 }
 0xa17   :  { %v2253_v13 = vpop.eup %2252 }
 0xa18   :  { %v2255_v15 = vpop.eup %2254  ;;  %803 = vrot.lane.b32.xlu0 %v2253_v13, %s2403_s12 }
 0xa19   :  { %870 = vrot.lane.b32.xlu1 %v2255_v15, %s2403_s12 }
 0xa8a   :  { %v804_v16 = vpop.permute.xlu0 %803 }
 0xa8b   :  { %v871_v14 = vpop.permute.xlu1 %870  ;;  %v806_v19 = vmul.f32 %v2249_v61, %v804_v16 }
 0xa8c   :  { %v873_v17 = vmul.f32 %v2251_v63, %v871_v14 }
 0xa8d   :  { %v875_v20 = vpack.c.bf16 %v806_v19, %v806_v19 }
 0xa8e   :  { %v874_v22 = vpack.c.bf16 %v873_v17, %v873_v17 }
 0xa8f   :  { %877 = vrot.lane.b32.xlu0 %v875_v20, %s2409_s11 }
 0xa90   :  { %923 = vrot.lane.b32.xlu1 %v874_v22, %s2409_s11 }
 0xb01   :  { %v878_v21 = vpop.permute.xlu0 %877 }
 0xb02   :  { %v924_v23 = vpop.permute.xlu1 %923  ;;  %2062 = vmatmul.mubr.msk.bf16.vlgmr.msra.gmra.mxu0 %vm113_vm1, %v878_v21 }
 0xb03   :  { %2070 = vmatmul.mubr.msk.bf16.vlgmr.msra.gmra.mxu1 %vm113_vm1, %v924_v23  ;;  %2074 = vmatpush3.bf16.msra.mxu0 %v2480_v2 }
 0xb04   :  { %2075 = vmatprep.subr.bf16.mxu0 %v2406_v0  ;;  %2077 = vmatprep.mubr.msk.bf16.mxu0 %vm2407_vm0, %v2406_v0 }
 0xb05   :  { %2082 = vmatpush3.bf16.msra.mxu1 %v2518_v27  ;;  %2085 = vmatprep.mubr.msk.bf16.mxu1 %vm2407_vm0, %v2406_v0 }
 0xb06   :  { %2083 = vmatprep.subr.bf16.mxu1 %v2406_v0 }
 0xb07   :  { %2076 = vmatpush3.bf16.msra.mxu0 %v2489_v4 }
 0xb08   :  { %2089 = vmatprep.subr.bf16.mxu0 %v2406_v0 }
 0xb09   :  { %2084 = vmatpush3.bf16.msra.mxu1 %v2533_v31 }
 0xb0a   :  { %2078 = vmatmul.mubr.msk.bf16.vlgmr.msra.gmra.mxu0 %vm113_vm1, %v924_v23  ;;  %2097 = vmatprep.subr.bf16.mxu1 %v2406_v0 }
 0xb0b   :  { %2090 = vmatpush3.bf16.msra.mxu0 %v2523_v28  ;;  %2093 = vmatprep.mubr.msk.bf16.mxu0 %vm2407_vm0, %v2406_v0 }
 0xb0c   :  { %2091 = vmatprep.subr.bf16.mxu0 %v2406_v0 }
 0xb0f   :  { %2092 = vmatpush3.bf16.msra.mxu0 %v2538_v32 }
 0xb10   :  { %2105 = vmatprep.subr.bf16.mxu0 %v2406_v0 }
 0xbc2   :  { %v916_v24 = vpop.f32.mrf.mxu0 }
 0xbc3   :  { %v962_v25 = vpop.f32.mrf.mxu1 }
 0xbc4   :  { %v963_v26 = vadd.f32 %v962_v25, %v916_v24  ;;  %v2063_v18 = vpop.f32.mrf.mxu0  ;;  %v180_v24 = vadd.f32 %v2510_v10, %v2580_v47 }
 0xbc5   :  { %v2071_v29 = vpop.f32.mrf.mxu1 }
 0xbc6   :  { %v968_v30 = vadd.f32 %v2586_v49, %v963_v26  ;;  %v919_v33 = vpop.f32.mrf.mxu0 }
 0xbc7   :  { %v965_v34 = vpop.f32.mrf.mxu1 }
 0xbc8   :  { %2256 = vtanh.f32 %v968_v30  ;;  %v2064_v35 = vpop.f32.mrf.mxu0  ;;  %v1859_v51 = vmul.f32 -1.442695, %v968_v30 }
 0xbc9   :  { %v2072_v37 = vpop.f32.mrf.mxu1 }
 0xbca   :  { %v1029_v38 = vpop.f32.mrf.mxu0 }
 0xbcb   :  { %v1035_v39 = vadd.f32 %v1029_v38, %v177_v36 }
 0xbcc   :  { %v2079_v40 = vpop.f32.mrf.mxu0 }
 0xbcd   :  { %2258 = vtanh.f32 %v1035_v39  ;;  %v1861_v52 = vmul.f32 -1.442695, %v1035_v39 }
 0xbce   :  { %v1032_v41 = vpop.f32.mrf.mxu0  ;;  %2260 = vpow2.f32 %v1859_v51 }
 0xbcf   :  { %2262 = vpow2.f32 %v1861_v52 }
 0xbd0   :  { %v2080_v43 = vpop.f32.mrf.mxu0 }
 0xbd5   :  { %v2257_v48 = vpop.eup %2256 }
 0xbd6   :  { %978 = vrot.lane.b32.xlu0 %v2257_v48, %s2403_s12 }
 0xbda   :  { %v2259_v50 = vpop.eup %2258 }
 0xbdb   :  { %1045 = vrot.lane.b32.xlu1 %v2259_v50, %s2403_s12  ;;  %v2261_v53 = vpop.eup %2260 }
 0xbdc   :  { %v972_v54 = vadd.f32 1.0, %v2261_v53  ;;  %v2263_v45 = vpop.eup %2262 }
 0xbdd   :  { %v1039_v55 = vadd.f32 1.0, %v2263_v45 }
 0xbde   :  { %2264 = vrcp.f32 %v972_v54 }
 0xbdf   :  { %2266 = vrcp.f32 %v1039_v55 }
 0xbeb   :  { %v2265_v42 = vpop.eup %2264 }
 0xbec   :  { %v2267_v58 = vpop.eup %2266  ;;  %v976_v61 = vmul.f32 %v2265_v42, %v2674_v11 }
 0xbed   :  { %v1043_v1 = vmul.f32 %v2267_v58, %v2676_v12 }
 0xc48   :  { %v979_v56 = vpop.permute.xlu0 %978 }
 0xc49   :  { %v981_v57 = vmul.f32 %v2265_v42, %v979_v56 }
 0xc4b   :  { %983 = vrot.lane.b32.xlu0 %v981_v57, %s2409_s11 }
 0xc4d   :  { %v1046_v59 = vpop.permute.xlu1 %1045 }
 0xc4e   :  { %v1048_v60 = vmul.f32 %v2267_v58, %v1046_v59 }
 0xc50   :  { %1050 = vrot.lane.b32.xlu1 %v1048_v60, %s2409_s11 }
 0xcbd   :  { %v984_v62 = vpop.permute.xlu0 %983 }
 0xcbe   :  { %v2713_v63 = vadd.f32 %v984_v62, %v976_v61 }
 0xcc0   :  { %2268 = vtanh.f32 %v2713_v63 }
 0xcc2   :  { %v1051_v9 = vpop.permute.xlu1 %1050 }
 0xcc3   :  { %v2717_v3 = vadd.f32 %v1051_v9, %v1043_v1 }
 0xcc5   :  { %2270 = vtanh.f32 %v2717_v3 }
 0xccd   :  { %v2269_v5 = vpop.eup %2268 }
 0xcce   :  { %989 = vrot.lane.b32.xlu0 %v2269_v5, %s2403_s12 }
 0xcd2   :  { %v2271_v6 = vpop.eup %2270 }
 0xcd3   :  { %1056 = vrot.lane.b32.xlu1 %v2271_v6, %s2403_s12 }
 0xd40   :  { %v990_v7 = vpop.permute.xlu0 %989 }
 0xd41   :  { %v992_v8 = vmul.f32 %v2265_v42, %v990_v7 }
 0xd43   :  { %v1061_v11 = vpack.c.bf16 %v992_v8, %v992_v8 }
 0xd45   :  { %1063 = vrot.lane.b32.xlu0 %v1061_v11, %s2409_s11  ;;  %v1057_v13 = vpop.permute.xlu1 %1056 }
 0xd46   :  { %v1059_v15 = vmul.f32 %v2267_v58, %v1057_v13 }
 0xd48   :  { %v1060_v16 = vpack.c.bf16 %v1059_v15, %v1059_v15 }
 0xd4a   :  { %1109 = vrot.lane.b32.xlu1 %v1060_v16, %s2409_s11  ;;  %v185_v16 = vadd.f32 %v2574_v44, %v2510_v10 }
 0xdb7   :  { %v1064_v12 = vpop.permute.xlu0 %1063 }
 0xdb8   :  { %2086 = vmatmul.mubr.msk.bf16.vlgmr.msra.gmra.mxu1 %vm113_vm1, %v1064_v12 }
 0xdb9   :  { %2098 = vmatpush3.bf16.msra.mxu1 %v2480_v2  ;;  %2101 = vmatprep.mubr.msk.bf16.mxu1 %vm2407_vm0, %v2406_v0 }
 0xdba   :  { %2099 = vmatprep.subr.bf16.mxu1 %v2406_v0 }
 0xdbc   :  { %v1110_v14 = vpop.permute.xlu1 %1109 }
 0xdbd   :  { %2100 = vmatpush3.bf16.msra.mxu1 %v2489_v4  ;;  %2094 = vmatmul.mubr.msk.bf16.vlgmr.msra.gmra.mxu0 %vm113_vm1, %v1110_v14 }
 0xdbe   :  { %2113 = vmatprep.subr.bf16.mxu1 %v2406_v0  ;;  %2106 = vmatpush3.bf16.msra.mxu0 %v2518_v27 }
 0xdbf   :  { %2107 = vmatprep.subr.bf16.mxu0 %v2406_v0  ;;  %2109 = vmatprep.mubr.msk.bf16.mxu0 %vm2407_vm0, %v2406_v0 }
 0xdc0   :  { %2102 = vmatmul.mubr.msk.bf16.vlgmr.msra.gmra.mxu1 %vm113_vm1, %v1110_v14 }
 0xdc1   :  { %2114 = vmatpush3.bf16.msra.mxu1 %v2523_v28  ;;  %2117 = vmatprep.mubr.msk.bf16.mxu1 %vm2407_vm0, %v2406_v0 }
 0xdc2   :  { %2115 = vmatprep.subr.bf16.mxu1 %v2406_v0  ;;  %2108 = vmatpush3.bf16.msra.mxu0 %v2533_v31 }
 0xdc3   :  { %2121 = vmatprep.subr.bf16.mxu0 %v2406_v0 }
 0xdc5   :  { %2116 = vmatpush3.bf16.msra.mxu1 %v2538_v32 }
 0xdc6   :  { %2129 = vmatprep.subr.bf16.mxu1 %v2406_v0 }
 0xe78   :  { %v1102_v19 = vpop.f32.mrf.mxu1 }
 0xe7a   :  { %v2087_v17 = vpop.f32.mrf.mxu1 }
 0xe7c   :  { %v1105_v20 = vpop.f32.mrf.mxu1 }
 0xe7d   :  { %v1148_v22 = vpop.f32.mrf.mxu0 }
 0xe7e   :  { %v2088_v21 = vpop.f32.mrf.mxu1  ;;  %v1149_v23 = vadd.f32 %v1148_v22, %v1102_v19 }
 0xe7f   :  { %v2095_v25 = vpop.f32.mrf.mxu0 }
 0xe80   :  { %v1154_v26 = vadd.f32 %v2586_v49, %v1149_v23  ;;  %v1215_v18 = vpop.f32.mrf.mxu1 }
 0xe81   :  { %v1221_v29 = vadd.f32 %v1215_v18, %v180_v24  ;;  %v1151_v30 = vpop.f32.mrf.mxu0 }
 0xe82   :  { %2272 = vtanh.f32 %v1154_v26  ;;  %v2103_v33 = vpop.f32.mrf.mxu1  ;;  %v1864_v39 = vmul.f32 -1.442695, %v1154_v26 }
 0xe83   :  { %2274 = vtanh.f32 %v1221_v29  ;;  %v2096_v34 = vpop.f32.mrf.mxu0  ;;  %v1866_v47 = vmul.f32 -1.442695, %v1221_v29 }
 0xe84   :  { %v1218_v35 = vpop.f32.mrf.mxu1  ;;  %2276 = vpow2.f32 %v1864_v39 }
 0xe85   :  { %2278 = vpow2.f32 %v1866_v47 }
 0xe86   :  { %v2104_v36 = vpop.f32.mrf.mxu1 }
 0xe8f   :  { %v2273_v37 = vpop.eup %2272 }
 0xe90   :  { %v2275_v38 = vpop.eup %2274  ;;  %1164 = vrot.lane.b32.xlu0 %v2273_v37, %s2403_s12 }
 0xe91   :  { %1231 = vrot.lane.b32.xlu1 %v2275_v38, %s2403_s12  ;;  %v2277_v40 = vpop.eup %2276 }
 0xe92   :  { %v2279_v41 = vpop.eup %2278  ;;  %v1158_v43 = vadd.f32 1.0, %v2277_v40 }
 0xe93   :  { %v1225_v48 = vadd.f32 1.0, %v2279_v41 }
 0xe94   :  { %2280 = vrcp.f32 %v1158_v43 }
 0xe95   :  { %2282 = vrcp.f32 %v1225_v48 }
 0xea1   :  { %v2281_v50 = vpop.eup %2280 }
 0xea2   :  { %v2283_v52 = vpop.eup %2282  ;;  %v1162_v55 = vmul.f32 %v2281_v50, %v2713_v63 }
 0xea3   :  { %v1229_v42 = vmul.f32 %v2283_v52, %v2717_v3 }
 0xf02   :  { %v1165_v51 = vpop.permute.xlu0 %1164 }
 0xf03   :  { %v1232_v53 = vpop.permute.xlu1 %1231  ;;  %v1167_v54 = vmul.f32 %v2281_v50, %v1165_v51 }
 0xf04   :  { %v1234_v45 = vmul.f32 %v2283_v52, %v1232_v53 }
 0xf05   :  { %1169 = vrot.lane.b32.xlu0 %v1167_v54, %s2409_s11 }
 0xf06   :  { %1236 = vrot.lane.b32.xlu1 %v1234_v45, %s2409_s11 }
 0xf77   :  { %v1170_v56 = vpop.permute.xlu0 %1169 }
 0xf78   :  { %v1237_v57 = vpop.permute.xlu1 %1236  ;;  %v2754_v58 = vadd.f32 %v1170_v56, %v1162_v55  ;;  %v2328_v55 = vld [vmem:[%s2866_s2 + $0x8] sm:$0xff]   ;;  %v2329_v56 = vld [vmem:[%s2866_s2] sm:$0xff]  }
 0xf79   :  { %v2756_v59 = vadd.f32 %v1237_v57, %v1229_v42  ;;  %v2330_v57 = vld [vmem:[#allocation3 + $0x8] sm:$0xff]  }
 0xf7a   :  { %2284 = vtanh.f32 %v2754_v58 }
 0xf7b   :  { %2286 = vtanh.f32 %v2756_v59 }
 0xf87   :  { %v2285_v60 = vpop.eup %2284 }
 0xf88   :  { %v2287_v61 = vpop.eup %2286  ;;  %1175 = vrot.lane.b32.xlu0 %v2285_v60, %s2403_s12  ;;  %v2333_v60 = vld [vmem:[%s2868_s4] sm:$0xff]  }
 0xf89   :  { %1242 = vrot.lane.b32.xlu1 %v2287_v61, %s2403_s12 }
 0xffa   :  { %v1176_v62 = vpop.permute.xlu0 %1175 }
 0xffb   :  { %v1243_v63 = vpop.permute.xlu1 %1242  ;;  %v1178_v1 = vmul.f32 %v2281_v50, %v1176_v62 }
 0xffc   :  { %v1245_v9 = vmul.f32 %v2283_v52, %v1243_v63 }
 0xffd   :  { %v1247_v3 = vpack.c.bf16 %v1178_v1, %v1178_v1 }
 0xffe   :  { %v1246_v5 = vpack.c.bf16 %v1245_v9, %v1245_v9 }
 0xfff   :  { %1249 = vrot.lane.b32.xlu0 %v1247_v3, %s2409_s11 }
0x1000   :  { %1295 = vrot.lane.b32.xlu1 %v1246_v5, %s2409_s11  ;;  %v2334_v5 = vld [vmem:[%s2867_s3] ss:$0 sm:$0xff] }
0x1071   :  { %v1250_v6 = vpop.permute.xlu0 %1249 }
0x1072   :  { %v1296_v7 = vpop.permute.xlu1 %1295  ;;  %2110 = vmatmul.mubr.msk.bf16.vlgmr.msra.gmra.mxu0 %vm113_vm1, %v1250_v6  ;;  %v188_v6 = vadd.f32 %v2334_v5, %v2578_v46  ;;  %v2199_v5 = vld [vmem:[#allocation6] sm:$0xff]  }
0x1073   :  { %2118 = vmatmul.mubr.msk.bf16.vlgmr.msra.gmra.mxu1 %vm113_vm1, %v1296_v7  ;;  %2122 = vmatpush3.bf16.msra.mxu0 %v2480_v2 }
0x1074   :  { %2123 = vmatprep.subr.bf16.mxu0 %v2406_v0  ;;  %2125 = vmatprep.mubr.msk.bf16.mxu0 %vm2407_vm0, %v2406_v0 }
0x1075   :  { %2130 = vmatpush3.bf16.msra.mxu1 %v2518_v27  ;;  %2133 = vmatprep.mubr.msk.bf16.mxu1 %vm2407_vm0, %v2406_v0 }
0x1076   :  { %2131 = vmatprep.subr.bf16.mxu1 %v2406_v0 }
0x1077   :  { %2124 = vmatpush3.bf16.msra.mxu0 %v2489_v4 }
0x1078   :  { %2137 = vmatprep.subr.bf16.mxu0 %v2406_v0 }
0x1079   :  { %2132 = vmatpush3.bf16.msra.mxu1 %v2533_v31 }
0x107a   :  { %2126 = vmatmul.mubr.msk.bf16.vlgmr.msra.gmra.mxu0 %vm113_vm1, %v1296_v7  ;;  %2145 = vmatprep.subr.bf16.mxu1 %v2406_v0 }
0x107b   :  { %2138 = vmatpush3.bf16.msra.mxu0 %v2523_v28  ;;  %2141 = vmatprep.mubr.msk.bf16.mxu0 %vm2407_vm0, %v2406_v0 }
0x107c   :  { %2139 = vmatprep.subr.bf16.mxu0 %v2406_v0 }
0x107f   :  { %2140 = vmatpush3.bf16.msra.mxu0 %v2538_v32 }
0x1080   :  { %2153 = vmatprep.subr.bf16.mxu0 %v2406_v0 }
0x1132   :  { %v1288_v2 = vpop.f32.mrf.mxu0 }
0x1133   :  { %v1334_v4 = vpop.f32.mrf.mxu1 }
0x1134   :  { %v1335_v27 = vadd.f32 %v1334_v4, %v1288_v2  ;;  %v2111_v8 = vpop.f32.mrf.mxu0 }
0x1135   :  { %v2119_v31 = vpop.f32.mrf.mxu1 }
0x1136   :  { %v1340_v11 = vadd.f32 %v2586_v49, %v1335_v27  ;;  %v1291_v13 = vpop.f32.mrf.mxu0 }
0x1137   :  { %v1337_v15 = vpop.f32.mrf.mxu1 }
0x1138   :  { %2288 = vtanh.f32 %v1340_v11  ;;  %v2112_v28 = vpop.f32.mrf.mxu0  ;;  %v1869_v23 = vmul.f32 -1.442695, %v1340_v11 }
0x1139   :  { %v2120_v12 = vpop.f32.mrf.mxu1 }
0x113a   :  { %v1401_v14 = vpop.f32.mrf.mxu0 }
0x113b   :  { %v1407_v19 = vadd.f32 %v1401_v14, %v185_v16 }
0x113c   :  { %v2127_v32 = vpop.f32.mrf.mxu0 }
0x113d   :  { %2290 = vtanh.f32 %v1407_v19  ;;  %v1871_v24 = vmul.f32 -1.442695, %v1407_v19 }
0x113e   :  { %v1404_v17 = vpop.f32.mrf.mxu0  ;;  %2292 = vpow2.f32 %v1869_v23 }
0x113f   :  { %2294 = vpow2.f32 %v1871_v24 }
0x1140   :  { %v2128_v20 = vpop.f32.mrf.mxu0 }
0x1145   :  { %v2289_v22 = vpop.eup %2288 }
0x1146   :  { %1350 = vrot.lane.b32.xlu0 %v2289_v22, %s2403_s12 }
0x114a   :  { %v2291_v21 = vpop.eup %2290 }
0x114b   :  { %1417 = vrot.lane.b32.xlu1 %v2291_v21, %s2403_s12  ;;  %v2293_v25 = vpop.eup %2292 }
0x114c   :  { %v1344_v26 = vadd.f32 1.0, %v2293_v25  ;;  %v2295_v10 = vpop.eup %2294 }
0x114d   :  { %v1411_v44 = vadd.f32 1.0, %v2295_v10 }
0x114e   :  { %2296 = vrcp.f32 %v1344_v26 }
0x114f   :  { %2298 = vrcp.f32 %v1411_v44 }
0x115b   :  { %v2297_v18 = vpop.eup %2296 }
0x115c   :  { %v2299_v33 = vpop.eup %2298  ;;  %v1348_v36 = vmul.f32 %v2297_v18, %v2754_v58  ;;  %v2331_v58 = vld [vmem:[%s2868_s4 + $0x8] sm:$0xff]  }
0x115d   :  { %v1415_v39 = vmul.f32 %v2299_v33, %v2756_v59  ;;  %v2332_v59 = vld [vmem:[#allocation3] sm:$0xff]  }
0x11b8   :  { %v1351_v29 = vpop.permute.xlu0 %1350 }
0x11b9   :  { %v1353_v30 = vmul.f32 %v2297_v18, %v1351_v29 }
0x11bb   :  { %1355 = vrot.lane.b32.xlu0 %v1353_v30, %s2409_s11 }
0x11bd   :  { %v1418_v34 = vpop.permute.xlu1 %1417 }
0x11be   :  { %v1420_v35 = vmul.f32 %v2299_v33, %v1418_v34 }
0x11c0   :  { %1422 = vrot.lane.b32.xlu1 %v1420_v35, %s2409_s11 }
0x122d   :  { %v1356_v37 = vpop.permute.xlu0 %1355 }
0x122e   :  { %v2793_v38 = vadd.f32 %v1356_v37, %v1348_v36 }
0x1230   :  { %2300 = vtanh.f32 %v2793_v38 }
0x1232   :  { %v1423_v47 = vpop.permute.xlu1 %1422 }
0x1233   :  { %v2797_v40 = vadd.f32 %v1423_v47, %v1415_v39 }
0x1235   :  { %2302 = vtanh.f32 %v2797_v40 }
0x123d   :  { %v2301_v41 = vpop.eup %2300 }
0x123e   :  { %1361 = vrot.lane.b32.xlu0 %v2301_v41, %s2403_s12 }
0x1242   :  { %v2303_v43 = vpop.eup %2302 }
0x1243   :  { %1428 = vrot.lane.b32.xlu1 %v2303_v43, %s2403_s12 }
0x12b0   :  { %v1362_v48 = vpop.permute.xlu0 %1361 }
0x12b1   :  { %v1364_v50 = vmul.f32 %v2297_v18, %v1362_v48 }
0x12b3   :  { %v1433_v51 = vpack.c.bf16 %v1364_v50, %v1364_v50 }
0x12b5   :  { %1435 = vrot.lane.b32.xlu0 %v1433_v51, %s2409_s11  ;;  %v1429_v52 = vpop.permute.xlu1 %1428 }
0x12b6   :  { %v1431_v53 = vmul.f32 %v2299_v33, %v1429_v52  ;;  %v2335_v52 = vld [vmem:[%s2870_s6] ss:$0 sm:$0xff] }
0x12b8   :  { %v1432_v54 = vpack.c.bf16 %v1431_v53, %v1431_v53 }
0x12ba   :  { %1481 = vrot.lane.b32.xlu1 %v1432_v54, %s2409_s11 }
0x1327   :  { %v1436_v45 = vpop.permute.xlu0 %1435 }
0x1328   :  { %2134 = vmatmul.mubr.msk.bf16.vlgmr.msra.gmra.mxu1 %vm113_vm1, %v1436_v45 }
0x1329   :  { %2146 = vmatpush3.bf16.msra.mxu1 %v2328_v55  ;;  %2149 = vmatprep.mubr.msk.bf16.mxu1 %vm2407_vm0, %v2406_v0 }
0x132a   :  { %2147 = vmatprep.subr.bf16.mxu1 %v2406_v0 }
0x132c   :  { %v1482_v42 = vpop.permute.xlu1 %1481 }
0x132d   :  { %2148 = vmatpush3.bf16.msra.mxu1 %v2329_v56  ;;  %2142 = vmatmul.mubr.msk.bf16.vlgmr.msra.gmra.mxu0 %vm113_vm1, %v1482_v42 }
0x132e   :  { %2161 = vmatprep.subr.bf16.mxu1 %v2406_v0  ;;  %2154 = vmatpush3.bf16.msra.mxu0 %v2330_v57 }
0x132f   :  { %2155 = vmatprep.subr.bf16.mxu0 %v2406_v0  ;;  %2157 = vmatprep.mubr.msk.bf16.mxu0 %vm2407_vm0, %v2406_v0 }
0x1330   :  { %2150 = vmatmul.mubr.msk.bf16.vlgmr.msra.gmra.mxu1 %vm113_vm1, %v1482_v42 }
0x1331   :  { %2162 = vmatpush3.bf16.msra.mxu1 %v2331_v58  ;;  %2165 = vmatprep.mubr.msk.bf16.mxu1 %vm2407_vm0, %v2406_v0 }
0x1332   :  { %2163 = vmatprep.subr.bf16.mxu1 %v2406_v0  ;;  %2156 = vmatpush3.bf16.msra.mxu0 %v2332_v59 }
0x1333   :  { %2169 = vmatprep.subr.bf16.mxu0 %v2406_v0 }
0x1335   :  { %2164 = vmatpush3.bf16.msra.mxu1 %v2333_v60 }
0x13e8   :  { %v1474_v61 = vpop.f32.mrf.mxu1 }
0x13ea   :  { %v2135_v62 = vpop.f32.mrf.mxu1 }
0x13ec   :  { %v1477_v63 = vpop.f32.mrf.mxu1 }
0x13ed   :  { %v1520_v1 = vpop.f32.mrf.mxu0 }
0x13ee   :  { %v2136_v9 = vpop.f32.mrf.mxu1  ;;  %v1521_v3 = vadd.f32 %v1520_v1, %v1474_v61 }
0x13ef   :  { %v2143_v7 = vpop.f32.mrf.mxu0 }
0x13f0   :  { %v1526_v2 = vadd.f32 %v2586_v49, %v1521_v3  ;;  %v1587_v4 = vpop.f32.mrf.mxu1  ;;  %v2198_v3 = vld [vmem:[#allocation6 + $0x8] sm:$0xff]  }
0x13f1   :  { %v1593_v27 = vadd.f32 %v1587_v4, %v188_v6  ;;  %v1523_v8 = vpop.f32.mrf.mxu0 }
0x13f2   :  { %2304 = vtanh.f32 %v1526_v2  ;;  %v2151_v31 = vpop.f32.mrf.mxu1  ;;  %v1874_v12 = vmul.f32 -1.442695, %v1526_v2  ;;  %v1880_v8 = vld [vmem:[%s2872_s8] ss:$0 sm:$0xff] }
0x13f3   :  { %2306 = vtanh.f32 %v1593_v27  ;;  %v2144_v11 = vpop.f32.mrf.mxu0  ;;  %v1876_v46 = vmul.f32 -1.442695, %v1593_v27 }
0x13f4   :  { %v1590_v13 = vpop.f32.mrf.mxu1  ;;  %2308 = vpow2.f32 %v1874_v12 }
0x13f5   :  { %2310 = vpow2.f32 %v1876_v46 }
0x13f6   :  { %v2152_v15 = vpop.f32.mrf.mxu1 }
0x13ff   :  { %v2305_v28 = vpop.eup %2304 }
0x1400   :  { %v2307_v16 = vpop.eup %2306  ;;  %1536 = vrot.lane.b32.xlu0 %v2305_v28, %s2403_s12 }
0x1401   :  { %1603 = vrot.lane.b32.xlu1 %v2307_v16, %s2403_s12  ;;  %v2309_v49 = vpop.eup %2308 }
0x1402   :  { %v2311_v14 = vpop.eup %2310  ;;  %v1530_v19 = vadd.f32 1.0, %v2309_v49 }
0x1403   :  { %v1597_v32 = vadd.f32 1.0, %v2311_v14 }
0x1404   :  { %2312 = vrcp.f32 %v1530_v19 }
0x1405   :  { %2314 = vrcp.f32 %v1597_v32 }
0x1411   :  { %v2313_v17 = vpop.eup %2312 }
0x1412   :  { %v2315_v22 = vpop.eup %2314  ;;  %v1534_v25 = vmul.f32 %v2313_v17, %v2793_v38 }
0x1413   :  { %v1601_v26 = vmul.f32 %v2315_v22, %v2797_v40 }
0x1472   :  { %v1537_v20 = vpop.permute.xlu0 %1536 }
0x1473   :  { %v1604_v21 = vpop.permute.xlu1 %1603  ;;  %v1539_v23 = vmul.f32 %v2313_v17, %v1537_v20 }
0x1474   :  { %v1606_v24 = vmul.f32 %v2315_v22, %v1604_v21 }
0x1475   :  { %1541 = vrot.lane.b32.xlu0 %v1539_v23, %s2409_s11 }
0x1476   :  { %1608 = vrot.lane.b32.xlu1 %v1606_v24, %s2409_s11 }
0x14e7   :  { %v1542_v10 = vpop.permute.xlu0 %1541 }
0x14e8   :  { %v1609_v44 = vpop.permute.xlu1 %1608  ;;  %v1544_v18 = vadd.f32 %v1542_v10, %v1534_v25 }
0x14e9   :  { %v1611_v29 = vadd.f32 %v1609_v44, %v1601_v26 }
0x14ea   :  { %2316 = vtanh.f32 %v1544_v18 }
0x14eb   :  { %2318 = vtanh.f32 %v1611_v29 }
0x14f7   :  { %v2317_v30 = vpop.eup %2316 }
0x14f8   :  { %v2319_v33 = vpop.eup %2318  ;;  %1547 = vrot.lane.b32.xlu0 %v2317_v30, %s2403_s12 }
0x14f9   :  { %1614 = vrot.lane.b32.xlu1 %v2319_v33, %s2403_s12 }
0x156a   :  { %v1548_v34 = vpop.permute.xlu0 %1547 }
0x156b   :  { %v1615_v35 = vpop.permute.xlu1 %1614  ;;  %v1550_v36 = vmul.f32 %v2313_v17, %v1548_v34 }
0x156c   :  { %v1617_v37 = vmul.f32 %v2315_v22, %v1615_v35 }
0x156d   :  { %v1619_v39 = vpack.c.bf16 %v1550_v36, %v1550_v36 }
0x156e   :  { %v1618_v38 = vpack.c.bf16 %v1617_v37, %v1617_v37 }
0x156f   :  { %1621 = vrot.lane.b32.xlu0 %v1619_v39, %s2409_s11 }
0x1570   :  { %1667 = vrot.lane.b32.xlu1 %v1618_v38, %s2409_s11 }
0x15e1   :  { %v1622_v47 = vpop.permute.xlu0 %1621 }
0x15e2   :  { %v1668_v40 = vpop.permute.xlu1 %1667  ;;  %2158 = vmatmul.mubr.msk.bf16.vlgmr.msra.gmra.mxu0 %vm113_vm1, %v1622_v47 }
0x15e3   :  { %2166 = vmatmul.mubr.msk.bf16.vlgmr.msra.gmra.mxu1 %vm113_vm1, %v1668_v40  ;;  %2173 = vmatprep.mubr.msk.bf16.mxu0 %vm2407_vm0, %v2406_v0 }
0x15e4   :  { %2170 = vmatpush3.bf16.msra.mxu0 %v2198_v3 }
0x15e5   :  { %2171 = vmatprep.subr.bf16.mxu0 %v2406_v0 }
0x15e8   :  { %2172 = vmatpush3.bf16.msra.mxu0 %v2199_v5 }
0x16a2   :  { %v1660_v41 = vpop.f32.mrf.mxu0 }
0x16a3   :  { %v1706_v43 = vpop.f32.mrf.mxu1 }
0x16a4   :  { %v1707_v48 = vadd.f32 %v1706_v43, %v1660_v41  ;;  %v2159_v50 = vpop.f32.mrf.mxu0 }
0x16a5   :  { %v2167_v51 = vpop.f32.mrf.mxu1 }
0x16a6   :  { %v1712_v53 = vadd.f32 %v2335_v52, %v1707_v48  ;;  %v1663_v54 = vpop.f32.mrf.mxu0 }
0x16a7   :  { %v1709_v45 = vpop.f32.mrf.mxu1 }
0x16a8   :  { %2320 = vtanh.f32 %v1712_v53  ;;  %v2160_v55 = vpop.f32.mrf.mxu0  ;;  %v1879_v57 = vmul.f32 -1.442695, %v1712_v53 }
0x16a9   :  { %v2168_v42 = vpop.f32.mrf.mxu1 }
0x16aa   :  { %2322 = vpow2.f32 %v1879_v57 }
0x16b5   :  { %v2321_v56 = vpop.eup %2320 }
0x16b6   :  { %1722 = vrot.lane.b32.xlu0 %v2321_v56, %s2403_s12 }
0x16b7   :  { %v2323_v58 = vpop.eup %2322 }
0x16b8   :  { %v1716_v59 = vadd.f32 1.0, %v2323_v58 }
0x16ba   :  { %2324 = vrcp.f32 %v1716_v59 }
0x16c7   :  { %v2325_v60 = vpop.eup %2324 }
0x16c8   :  { %v1720_v63 = vmul.f32 %v2325_v60, %v1544_v18 }
0x1728   :  { %v1723_v61 = vpop.permute.xlu0 %1722 }
0x1729   :  { %v1725_v62 = vmul.f32 %v2325_v60, %v1723_v61 }
0x172b   :  { %1727 = vrot.lane.b32.xlu1 %v1725_v62, %s2409_s11 }
0x179d   :  { %v1728_v1 = vpop.permute.xlu1 %1727 }
0x179e   :  { %v1730_v9 = vadd.f32 %v1728_v1, %v1720_v63 }
0x17a0   :  { %2326 = vtanh.f32 %v1730_v9 }
0x17ad   :  { %v2327_v6 = vpop.eup %2326 }
0x17ae   :  { %1733 = vrot.lane.b32.xlu0 %v2327_v6, %s2403_s12  ;;  %s2376_s12 = scalar_lea.vmem %s1815_s1, 128 }
0x17af   :  { %p2377_p10 = scmp.ne.s32.totalorder %s1815_s1, %s2376_s12  ;;  %p2382_p12 = scmp.lt.s32.totalorder %s2376_s12, %s2376_s12 }
0x17b1   :  { %p2383_p13 = por %p2382_p12, %p2381_p11 }
0x17b3   :  { %p2384_p0 = pnand %p2383_p13, %p2377_p10 }
0x1820   :  { %v1734_v7 = vpop.permute.xlu0 %1733 }
0x1821   :  { %v1736_v2 = vmul.f32 %v2325_v60, %v1734_v7 }
0x1823   :  { %v1737_v4 = vpack.c.bf16 %v1736_v2, %v1736_v2 }
0x1825   :  { %1750 = vrot.lane.b32.xlu1 %v1737_v4, %s2409_s11 }
0x1897   :  { %v1751_v27 = vpop.permute.xlu1 %1750 }
0x1898   :  { %2174 = vmatmul.mubr.msk.bf16.vlgmr.msra.gmra.mxu0 %vm113_vm1, %v1751_v27 }
0x1958   :  { %v1801_v31 = vpop.f32.mrf.mxu0 }
0x1959   :  { %v1802_v0 = vadd.f32 %v1880_v8, %v1801_v31 }
0x195a   :  { %v2175_v11 = vpop.f32.mrf.mxu0 }
0x195b   :  { %1807 = vst [vmem:[#allocation8] sm:$0xff] %v1802_v0 }
0x195c   :  { %v1804_v13 = vpop.f32.mrf.mxu0 }
0x195d   :  { %2387 = shalt.err (!%p2384_p0)
}
0x195e   :  { %1817 = dma.vmem_to_hbm [thread:$0]  %s1815_s1, 128, %s2873_s9, [#allocation5]   ;;  %v2176_v15 = vpop.f32.mrf.mxu0 }
0x195f   :  { %2400 = dma.done.wait [#allocation5], 128  }
0x1960   :  { %2401 = vsyncadd [#allocation5], 4294967168 }
0x1961   :  { %1821 = vsyncpa [#allocation4], 1 }
0x1962   :  { %1822 = vsyncpa [#allocation7], 1 }
0x1963   :  { %1823 = vsyncpa [#allocation5], 1 }

</bundles_post_ra>
